<compile_context>
chip_gen: v5e
topology: v5e:2x2
jax: 0.10.0
libtpu: 0.0.40
codegen_flags: <defaults>
</compile_context>

<pallas_src>
import functools
import itertools

import numpy as np

import jax
import jax.numpy as jnp
from jax.experimental import pallas as pl
from jax.experimental.pallas import tpu as pltpu


# ------------------------------- Pallas kernel ------------------------------

def _fused_down_conv_kernel(subs_ref, w_ref, m_ref, o_ref, *, starts, s_len):
    """One grid step = one (batch item, Cout tile).

    subs_ref : (8*Cin, G+S) bf16  parity sub-volumes, flat spatial, G-lane zero
                                  guard in front (G >= max tap shift).
    w_ref    : (8, TCo, 8*Cin) bf16  per-shift-combo weight matrices.
    m_ref    : (8, S) bf16           per-combo front-boundary masks (0/1).
    o_ref    : (TCo, S) f32          normalized + LeakyReLU output.
    """
    masks = m_ref[...]                                     # (8, S)

    # Combo 0 (no shift, no boundary mask) initializes the accumulator directly
    # -> no zero-fill + "+=" pass.
    acc = jnp.dot(w_ref[0], subs_ref[:, pl.ds(starts[0], s_len)],
                  preferred_element_type=jnp.float32)      # (TCo, S) f32
    for i in range(1, 8):                                  # static unroll
        t = subs_ref[:, pl.ds(starts[i], s_len)] * masks[i:i + 1, :]
        acc = acc + jnp.dot(w_ref[i], t, preferred_element_type=jnp.float32)

    # InstanceNorm3d (affine=False, eps=1e-5): per-channel stats over S lanes.
    # Two-pass variance (data already resident) avoids E[x^2]-mean^2 cancellation.
    mean = jnp.mean(acc, axis=-1, keepdims=True)
    cen = acc - mean
    var = jnp.mean(cen * cen, axis=-1, keepdims=True)
    z = cen * jax.lax.rsqrt(var + 1e-5)
    # LeakyReLU(0.2)
    o_ref[...] = jnp.where(z >= 0.0, z, 0.2 * z).astype(o_ref.dtype)


# ------------------------------- JAX glue -----------------------------------

def _pick_cout_tile(cout, cap=128):
    if cout <= cap:
        return cout
    for t in range(cap, 7, -8):
        if cout % t == 0:
            return t
    return cout


def _vmem_limit_bytes():
    # ~3/4 of physical VMEM, capped at 100 MiB: ~96 MiB on v5e/v6e (128 MiB),
    # ~48 MiB on 64-MiB parts (v7x).  Falls back conservatively if unavailable.
    try:
        cap = int(pltpu.get_tpu_info().vmem_capacity_bytes)
    except Exception:
        cap = 64 * 2 ** 20
    return min(int(cap * 3 // 4), 100 * 2 ** 20)


def down_conv_block(x, weight, bias=None):
    """Forward pass of DownConvBlock.

    x: (N, Cin, D, H, W) f32, weight: (Cout, Cin, 3, 3, 3), bias: (Cout,)|None.
    Returns (N, Cout, D//2, H//2, W//2) f32.

    Note: the Conv3d bias is accepted for API parity but unused — it is a
    per-channel constant and cancels exactly through InstanceNorm3d(affine=False)
    (same in the PyTorch module).
    """
    del bias
    N, Cin, D, H, W = x.shape
    Cout = weight.shape[0]
    assert D % 2 == 0 and H % 2 == 0 and W % 2 == 0, "even spatial dims required"
    Do, Ho, Wo = D // 2, H // 2, W // 2
    S = Do * Ho * Wo

    # ---- 8 stride-2 parity sub-volumes, flat spatial: (N, 8*Cin, G+S) bf16 --
    # subs[n, p*Cin+ci, do*Ho*Wo + ho*Wo + wo] = x[n, ci, 2do+pd, 2ho+ph, 2wo+pw]
    # with p = pd*4 + ph*2 + pw.  One cast+transpose pass over 1x the input;
    # the guard lanes make every (-1)-shifted tap a plain contiguous window.
    xb = x.astype(jnp.bfloat16)
    subs = (xb.reshape(N, Cin, Do, 2, Ho, 2, Wo, 2)
              .transpose(0, 3, 5, 7, 1, 2, 4, 6)
              .reshape(N, 8 * Cin, S))
    max_shift = Ho * Wo + Wo + 1
    G = ((max_shift + 127) // 128) * 128            # keep G+S lane-tile friendly
    subs = jnp.pad(subs, ((0, 0), (0, 0), (G, 0)))  # zero guard (content masked)

    # ---- per-shift-combo weights, window starts, front-boundary masks -------
    # Combo sigma=(sd,sh,sw): sd=1 means the tap is kd=0 (needs a -1 shift along
    # D); sd=0 means kd is 1 or 2 depending on the sub-volume's parity.
    combos = list(itertools.product((0, 1), repeat=3))
    fidx = np.arange(S)
    d_i, h_i, w_i = fidx // (Ho * Wo), (fidx // Wo) % Ho, fidx % Wo
    w_rows, starts, mask_rows = [], [], []
    for sd, sh, sw in combos:
        cols = []
        for pd, ph, pw in combos:                   # sub-volume parities, same order
            used = (pd or not sd) and (ph or not sh) and (pw or not sw)
            if used:
                kd = 0 if sd else (2 if pd else 1)
                kh = 0 if sh else (2 if ph else 1)
                kw = 0 if sw else (2 if pw else 1)
                cols.append(weight[:, :, kd, kh, kw])          # (Cout, Cin)
            else:
                cols.append(jnp.zeros((Cout, Cin), weight.dtype))
        w_rows.append(jnp.concatenate(cols, axis=1))           # (Cout, 8*Cin)
        starts.append(G - (sd * Ho * Wo + sh * Wo + sw))
        m = np.ones((S,), np.float32)
        if sd:
            m *= (d_i > 0)
        if sh:
            m *= (h_i > 0)
        if sw:
            m *= (w_i > 0)
        mask_rows.append(m)
    wcombos = jnp.stack(w_rows, axis=0).astype(jnp.bfloat16)       # (8, Cout, 8*Cin)
    masks = jnp.asarray(np.stack(mask_rows), dtype=jnp.bfloat16)   # (8, S)

    TCo = _pick_cout_tile(Cout)
    nco = Cout // TCo

    kernel = functools.partial(_fused_down_conv_kernel,
                               starts=tuple(int(s) for s in starts), s_len=S)

    out = pl.pallas_call(
        kernel,
        out_shape=jax.ShapeDtypeStruct((N, Cout, S), jnp.float32),
        grid_spec=pltpu.PrefetchScalarGridSpec(
            num_scalar_prefetch=0,
            grid=(N, nco),
            in_specs=[
                pl.BlockSpec((None, 8 * Cin, G + S), lambda n, j: (n, 0, 0)),
                pl.BlockSpec((8, TCo, 8 * Cin), lambda n, j: (0, j, 0)),
                pl.BlockSpec((8, S), lambda n, j: (0, 0)),
            ],
            out_specs=pl.BlockSpec((None, TCo, S), lambda n, j: (n, j, 0)),
        ),
        compiler_params=pltpu.CompilerParams(
            dimension_semantics=("parallel", "parallel"),
            vmem_limit_bytes=_vmem_limit_bytes(),
        ),
    )(subs, wcombos, masks)

    # (N, Cout, S) -> (N, Cout, Do, Ho, Wo): pure view, no transpose.
    return out.reshape(N, Cout, Do, Ho, Wo)


# ------------------------------ reference (JAX) -----------------------------

def _reference(x, weight, bias):
    dn = ('NCDHW', 'OIDHW', 'NCDHW')
    y = jax.lax.conv_general_dilated(
        x, weight, (2, 2, 2), [(1, 1)] * 3, dimension_numbers=dn)
    y = y + bias.reshape(1, -1, 1, 1, 1)
    m = y.mean(axis=(2, 3, 4), keepdims=True)
    v = ((y - m) ** 2).mean(axis=(2, 3, 4), keepdims=True)
    z = (y - m) / jnp.sqrt(v + 1e-5)
    return jnp.where(z >= 0, z, 0.2 * z)


# ------------------------------------ main ----------------------------------

if __name__ == "__main__":
    key = jax.random.PRNGKey(0)
    k1, k2, kx = jax.random.split(key, 3)

    N, Cin, Cout, D, H, W = 2, 4, 8, 16, 16, 16
    w = jax.random.normal(k1, (Cout, Cin, 3, 3, 3), jnp.float32) * 0.1
    b = jax.random.normal(k2, (Cout,), jnp.float32) * 0.1
    x = jax.random.normal(kx, (N, Cin, D, H, W), jnp.float32)

    fwd = jax.jit(down_conv_block)
    out = jax.block_until_ready(fwd(x, w, b))

    assert out.shape == (N, Cout, D // 2, H // 2, W // 2), out.shape
    ref = _reference(x, w, b)
    max_err = float(jnp.max(jnp.abs(out - ref)))
    # bf16 MXU operands (f32 accumulation) -> loosened tolerance vs f32 ref.
    assert jnp.allclose(out, ref, atol=3e-2, rtol=3e-2), max_err

    print("KERNEL_OK")
</pallas_src>

<mosaic_0001>
module attributes {stable_mosaic.version = 11 : i64} {
  func.func @_fused_down_conv_kernel(%arg0: i32, %arg1: i32, %arg2: memref<1x32x640xbf16, #tpu.memory_space<vmem>>, %arg3: memref<8x8x32xbf16, #tpu.memory_space<vmem>>, %arg4: memref<8x512xbf16, #tpu.memory_space<vmem>>, %arg5: memref<1x8x512xf32, #tpu.memory_space<vmem>>) attributes {dimension_semantics = [#tpu.dimension_semantics<parallel>, #tpu.dimension_semantics<parallel>], iteration_bounds = array<i64: 2, 1>, scalar_prefetch = 0 : i64, scratch_operands = 0 : i64, tpu.core_type = #tpu.core_type<tc>, window_params = [{transform_indices = @transform_0, window_bounds = array<i64: 1, 32, 640>}, {transform_indices = @transform_1, window_bounds = array<i64: 8, 8, 32>}, {pipeline_mode = #tpu.pipeline_mode<synchronous>, transform_indices = @transform_2, window_bounds = array<i64: 8, 512>}, {transform_indices = @transform_3, window_bounds = array<i64: 1, 8, 512>}]} {
    %c0 = arith.constant 0 : index
    %c0_0 = arith.constant 0 : index
    %0 = vector.load %arg4[%c0, %c0_0] : memref<8x512xbf16, #tpu.memory_space<vmem>>, vector<8x512xbf16>
    %c0_1 = arith.constant 0 : index
    %c0_2 = arith.constant 0 : index
    %c0_3 = arith.constant 0 : index
    %1 = vector.load %arg3[%c0_1, %c0_2, %c0_3] : memref<8x8x32xbf16, #tpu.memory_space<vmem>>, vector<1x8x32xbf16>
    %2 = vector.shape_cast %1 : vector<1x8x32xbf16> to vector<8x32xbf16>
    %c0_4 = arith.constant 0 : index
    %c0_5 = arith.constant 0 : index
    %c128 = arith.constant 128 : index
    %3 = vector.load %arg2[%c0_4, %c0_5, %c128] : memref<1x32x640xbf16, #tpu.memory_space<vmem>>, vector<1x32x512xbf16>
    %4 = vector.shape_cast %3 : vector<1x32x512xbf16> to vector<32x512xbf16>
    %cst = arith.constant dense<0.000000e+00> : vector<8x512xf32>
    %5 = tpu.matmul %2, %4, %cst {dimension_numbers = #tpu.dot_dimension_numbers<[1], [0], [0], [1], [0, 0, 1, 1], [], []>} : vector<8x32xbf16>, vector<32x512xbf16>, vector<8x512xf32> -> vector<8x512xf32>
    %c0_6 = arith.constant 0 : index
    %c0_7 = arith.constant 0 : index
    %c127 = arith.constant 127 : index
    %6 = vector.load %arg2[%c0_6, %c0_7, %c127] : memref<1x32x640xbf16, #tpu.memory_space<vmem>>, vector<1x32x512xbf16>
    %7 = vector.shape_cast %6 : vector<1x32x512xbf16> to vector<32x512xbf16>
    %8 = vector.extract_strided_slice %0 {offsets = [1, 0], sizes = [1, 512], strides = [1, 1]} : vector<8x512xbf16> to vector<1x512xbf16>
    %9 = vector.broadcast %8 : vector<1x512xbf16> to vector<32x512xbf16>
    %10 = arith.mulf %7, %9 : vector<32x512xbf16>
    %c1 = arith.constant 1 : index
    %c0_8 = arith.constant 0 : index
    %c0_9 = arith.constant 0 : index
    %11 = vector.load %arg3[%c1, %c0_8, %c0_9] : memref<8x8x32xbf16, #tpu.memory_space<vmem>>, vector<1x8x32xbf16>
    %12 = vector.shape_cast %11 : vector<1x8x32xbf16> to vector<8x32xbf16>
    %cst_10 = arith.constant dense<0.000000e+00> : vector<8x512xf32>
    %13 = tpu.matmul %12, %10, %cst_10 {dimension_numbers = #tpu.dot_dimension_numbers<[1], [0], [0], [1], [0, 0, 1, 1], [], []>} : vector<8x32xbf16>, vector<32x512xbf16>, vector<8x512xf32> -> vector<8x512xf32>
    %14 = arith.addf %5, %13 : vector<8x512xf32>
    %c0_11 = arith.constant 0 : index
    %c0_12 = arith.constant 0 : index
    %c120 = arith.constant 120 : index
    %15 = vector.load %arg2[%c0_11, %c0_12, %c120] : memref<1x32x640xbf16, #tpu.memory_space<vmem>>, vector<1x32x512xbf16>
    %16 = vector.shape_cast %15 : vector<1x32x512xbf16> to vector<32x512xbf16>
    %17 = vector.extract_strided_slice %0 {offsets = [2, 0], sizes = [1, 512], strides = [1, 1]} : vector<8x512xbf16> to vector<1x512xbf16>
    %18 = vector.broadcast %17 : vector<1x512xbf16> to vector<32x512xbf16>
    %19 = arith.mulf %16, %18 : vector<32x512xbf16>
    %c2 = arith.constant 2 : index
    %c0_13 = arith.constant 0 : index
    %c0_14 = arith.constant 0 : index
    %20 = vector.load %arg3[%c2, %c0_13, %c0_14] : memref<8x8x32xbf16, #tpu.memory_space<vmem>>, vector<1x8x32xbf16>
    %21 = vector.shape_cast %20 : vector<1x8x32xbf16> to vector<8x32xbf16>
    %cst_15 = arith.constant dense<0.000000e+00> : vector<8x512xf32>
    %22 = tpu.matmul %21, %19, %cst_15 {dimension_numbers = #tpu.dot_dimension_numbers<[1], [0], [0], [1], [0, 0, 1, 1], [], []>} : vector<8x32xbf16>, vector<32x512xbf16>, vector<8x512xf32> -> vector<8x512xf32>
    %23 = arith.addf %14, %22 : vector<8x512xf32>
    %c0_16 = arith.constant 0 : index
    %c0_17 = arith.constant 0 : index
    %c119 = arith.constant 119 : index
    %24 = vector.load %arg2[%c0_16, %c0_17, %c119] : memref<1x32x640xbf16, #tpu.memory_space<vmem>>, vector<1x32x512xbf16>
    %25 = vector.shape_cast %24 : vector<1x32x512xbf16> to vector<32x512xbf16>
    %26 = vector.extract_strided_slice %0 {offsets = [3, 0], sizes = [1, 512], strides = [1, 1]} : vector<8x512xbf16> to vector<1x512xbf16>
    %27 = vector.broadcast %26 : vector<1x512xbf16> to vector<32x512xbf16>
    %28 = arith.mulf %25, %27 : vector<32x512xbf16>
    %c3 = arith.constant 3 : index
    %c0_18 = arith.constant 0 : index
    %c0_19 = arith.constant 0 : index
    %29 = vector.load %arg3[%c3, %c0_18, %c0_19] : memref<8x8x32xbf16, #tpu.memory_space<vmem>>, vector<1x8x32xbf16>
    %30 = vector.shape_cast %29 : vector<1x8x32xbf16> to vector<8x32xbf16>
    %cst_20 = arith.constant dense<0.000000e+00> : vector<8x512xf32>
    %31 = tpu.matmul %30, %28, %cst_20 {dimension_numbers = #tpu.dot_dimension_numbers<[1], [0], [0], [1], [0, 0, 1, 1], [], []>} : vector<8x32xbf16>, vector<32x512xbf16>, vector<8x512xf32> -> vector<8x512xf32>
    %32 = arith.addf %23, %31 : vector<8x512xf32>
    %c0_21 = arith.constant 0 : index
    %c0_22 = arith.constant 0 : index
    %c64 = arith.constant 64 : index
    %33 = vector.load %arg2[%c0_21, %c0_22, %c64] : memref<1x32x640xbf16, #tpu.memory_space<vmem>>, vector<1x32x512xbf16>
    %34 = vector.shape_cast %33 : vector<1x32x512xbf16> to vector<32x512xbf16>
    %35 = vector.extract_strided_slice %0 {offsets = [4, 0], sizes = [1, 512], strides = [1, 1]} : vector<8x512xbf16> to vector<1x512xbf16>
    %36 = vector.broadcast %35 : vector<1x512xbf16> to vector<32x512xbf16>
    %37 = arith.mulf %34, %36 : vector<32x512xbf16>
    %c4 = arith.constant 4 : index
    %c0_23 = arith.constant 0 : index
    %c0_24 = arith.constant 0 : index
    %38 = vector.load %arg3[%c4, %c0_23, %c0_24] : memref<8x8x32xbf16, #tpu.memory_space<vmem>>, vector<1x8x32xbf16>
    %39 = vector.shape_cast %38 : vector<1x8x32xbf16> to vector<8x32xbf16>
    %cst_25 = arith.constant dense<0.000000e+00> : vector<8x512xf32>
    %40 = tpu.matmul %39, %37, %cst_25 {dimension_numbers = #tpu.dot_dimension_numbers<[1], [0], [0], [1], [0, 0, 1, 1], [], []>} : vector<8x32xbf16>, vector<32x512xbf16>, vector<8x512xf32> -> vector<8x512xf32>
    %41 = arith.addf %32, %40 : vector<8x512xf32>
    %c0_26 = arith.constant 0 : index
    %c0_27 = arith.constant 0 : index
    %c63 = arith.constant 63 : index
    %42 = vector.load %arg2[%c0_26, %c0_27, %c63] : memref<1x32x640xbf16, #tpu.memory_space<vmem>>, vector<1x32x512xbf16>
    %43 = vector.shape_cast %42 : vector<1x32x512xbf16> to vector<32x512xbf16>
    %44 = vector.extract_strided_slice %0 {offsets = [5, 0], sizes = [1, 512], strides = [1, 1]} : vector<8x512xbf16> to vector<1x512xbf16>
    %45 = vector.broadcast %44 : vector<1x512xbf16> to vector<32x512xbf16>
    %46 = arith.mulf %43, %45 : vector<32x512xbf16>
    %c5 = arith.constant 5 : index
    %c0_28 = arith.constant 0 : index
    %c0_29 = arith.constant 0 : index
    %47 = vector.load %arg3[%c5, %c0_28, %c0_29] : memref<8x8x32xbf16, #tpu.memory_space<vmem>>, vector<1x8x32xbf16>
    %48 = vector.shape_cast %47 : vector<1x8x32xbf16> to vector<8x32xbf16>
    %cst_30 = arith.constant dense<0.000000e+00> : vector<8x512xf32>
    %49 = tpu.matmul %48, %46, %cst_30 {dimension_numbers = #tpu.dot_dimension_numbers<[1], [0], [0], [1], [0, 0, 1, 1], [], []>} : vector<8x32xbf16>, vector<32x512xbf16>, vector<8x512xf32> -> vector<8x512xf32>
    %50 = arith.addf %41, %49 : vector<8x512xf32>
    %c0_31 = arith.constant 0 : index
    %c0_32 = arith.constant 0 : index
    %c56 = arith.constant 56 : index
    %51 = vector.load %arg2[%c0_31, %c0_32, %c56] : memref<1x32x640xbf16, #tpu.memory_space<vmem>>, vector<1x32x512xbf16>
    %52 = vector.shape_cast %51 : vector<1x32x512xbf16> to vector<32x512xbf16>
    %53 = vector.extract_strided_slice %0 {offsets = [6, 0], sizes = [1, 512], strides = [1, 1]} : vector<8x512xbf16> to vector<1x512xbf16>
    %54 = vector.broadcast %53 : vector<1x512xbf16> to vector<32x512xbf16>
    %55 = arith.mulf %52, %54 : vector<32x512xbf16>
    %c6 = arith.constant 6 : index
    %c0_33 = arith.constant 0 : index
    %c0_34 = arith.constant 0 : index
    %56 = vector.load %arg3[%c6, %c0_33, %c0_34] : memref<8x8x32xbf16, #tpu.memory_space<vmem>>, vector<1x8x32xbf16>
    %57 = vector.shape_cast %56 : vector<1x8x32xbf16> to vector<8x32xbf16>
    %cst_35 = arith.constant dense<0.000000e+00> : vector<8x512xf32>
    %58 = tpu.matmul %57, %55, %cst_35 {dimension_numbers = #tpu.dot_dimension_numbers<[1], [0], [0], [1], [0, 0, 1, 1], [], []>} : vector<8x32xbf16>, vector<32x512xbf16>, vector<8x512xf32> -> vector<8x512xf32>
    %59 = arith.addf %50, %58 : vector<8x512xf32>
    %c0_36 = arith.constant 0 : index
    %c0_37 = arith.constant 0 : index
    %c55 = arith.constant 55 : index
    %60 = vector.load %arg2[%c0_36, %c0_37, %c55] : memref<1x32x640xbf16, #tpu.memory_space<vmem>>, vector<1x32x512xbf16>
    %61 = vector.shape_cast %60 : vector<1x32x512xbf16> to vector<32x512xbf16>
    %62 = vector.extract_strided_slice %0 {offsets = [7, 0], sizes = [1, 512], strides = [1, 1]} : vector<8x512xbf16> to vector<1x512xbf16>
    %63 = vector.broadcast %62 : vector<1x512xbf16> to vector<32x512xbf16>
    %64 = arith.mulf %61, %63 : vector<32x512xbf16>
    %c7 = arith.constant 7 : index
    %c0_38 = arith.constant 0 : index
    %c0_39 = arith.constant 0 : index
    %65 = vector.load %arg3[%c7, %c0_38, %c0_39] : memref<8x8x32xbf16, #tpu.memory_space<vmem>>, vector<1x8x32xbf16>
    %66 = vector.shape_cast %65 : vector<1x8x32xbf16> to vector<8x32xbf16>
    %cst_40 = arith.constant dense<0.000000e+00> : vector<8x512xf32>
    %67 = tpu.matmul %66, %64, %cst_40 {dimension_numbers = #tpu.dot_dimension_numbers<[1], [0], [0], [1], [0, 0, 1, 1], [], []>} : vector<8x32xbf16>, vector<32x512xbf16>, vector<8x512xf32> -> vector<8x512xf32>
    %68 = arith.addf %59, %67 : vector<8x512xf32>
    %cst_41 = arith.constant dense<0.000000e+00> : vector<8xf32>
    %69 = vector.multi_reduction <add>, %68, %cst_41 [1] : vector<8x512xf32> to vector<8xf32>
    %70 = vector.shape_cast %69 : vector<8xf32> to vector<8x1xf32>
    %cst_42 = arith.constant 5.120000e+02 : f32
    %71 = vector.broadcast %cst_42 : f32 to vector<8x1xf32>
    %72 = arith.divf %70, %71 : vector<8x1xf32>
    %73 = vector.broadcast %72 : vector<8x1xf32> to vector<8x512xf32>
    %74 = arith.subf %68, %73 : vector<8x512xf32>
    %75 = arith.mulf %74, %74 : vector<8x512xf32>
    %cst_43 = arith.constant dense<0.000000e+00> : vector<8xf32>
    %76 = vector.multi_reduction <add>, %75, %cst_43 [1] : vector<8x512xf32> to vector<8xf32>
    %77 = vector.shape_cast %76 : vector<8xf32> to vector<8x1xf32>
    %cst_44 = arith.constant 5.120000e+02 : f32
    %78 = vector.broadcast %cst_44 : f32 to vector<8x1xf32>
    %79 = arith.divf %77, %78 : vector<8x1xf32>
    %cst_45 = arith.constant 9.99999974E-6 : f32
    %80 = vector.broadcast %cst_45 : f32 to vector<8x1xf32>
    %81 = arith.addf %79, %80 : vector<8x1xf32>
    %82 = math.rsqrt %81 : vector<8x1xf32>
    %83 = vector.broadcast %82 : vector<8x1xf32> to vector<8x512xf32>
    %84 = arith.mulf %74, %83 : vector<8x512xf32>
    %cst_46 = arith.constant 0.000000e+00 : f32
    %85 = vector.broadcast %cst_46 : f32 to vector<8x512xf32>
    %86 = arith.cmpf oge, %84, %85 : vector<8x512xf32>
    %cst_47 = arith.constant 2.000000e-01 : f32
    %87 = vector.broadcast %cst_47 : f32 to vector<8x512xf32>
    %88 = arith.mulf %87, %84 : vector<8x512xf32>
    %89 = arith.select %86, %84, %88 : vector<8x512xi1>, vector<8x512xf32>
    %c0_48 = arith.constant 0 : index
    %c0_49 = arith.constant 0 : index
    %c0_50 = arith.constant 0 : index
    %90 = vector.load %arg5[%c0_48, %c0_49, %c0_50] : memref<1x8x512xf32, #tpu.memory_space<vmem>>, vector<1x8x512xf32>
    %91 = vector.shape_cast %90 : vector<1x8x512xf32> to vector<8x512xf32>
    %92 = vector.shape_cast %89 : vector<8x512xf32> to vector<1x8x512xf32>
    tpu.vector_store %arg5[%c0_48, %c0_49, %c0_50], %92 {strides = array<i32>} : memref<1x8x512xf32, #tpu.memory_space<vmem>>, vector<1x8x512xf32>,
    return
  }
  func.func @transform_0(%arg0: i32, %arg1: i32) -> (i32, i32, i32) {
    %c0_i32 = arith.constant 0 : i32
    %c0_i32_0 = arith.constant 0 : i32
    %c0_i32_1 = arith.constant 0 : i32
    return %arg0, %c0_i32, %c0_i32_0 : i32, i32, i32
  }
  func.func @transform_1(%arg0: i32, %arg1: i32) -> (i32, i32, i32) {
    %c0_i32 = arith.constant 0 : i32
    %c0_i32_0 = arith.constant 0 : i32
    %c0_i32_1 = arith.constant 0 : i32
    return %c0_i32, %arg1, %c0_i32_0 : i32, i32, i32
  }
  func.func @transform_2(%arg0: i32, %arg1: i32) -> (i32, i32) {
    %c0_i32 = arith.constant 0 : i32
    %c0_i32_0 = arith.constant 0 : i32
    %c0_i32_1 = arith.constant 0 : i32
    return %c0_i32, %c0_i32_0 : i32, i32
  }
  func.func @transform_3(%arg0: i32, %arg1: i32) -> (i32, i32, i32) {
    %c0_i32 = arith.constant 0 : i32
    %c0_i32_0 = arith.constant 0 : i32
    return %arg0, %arg1, %c0_i32 : i32, i32, i32
  }
}

</mosaic_0001>

<bundles_post_ra>
// kernel: down_conv_block.1
= control target key start
LH: loop header
LB: loop body
LE: loop exit
PB: predicated region body
PF: predicated region fallthrough
CT: control target
= control target key end

     0   :  { %s1968_s12 = smov 0   ;;  %s1970_s13 = smov 0   ;;  %s2722_s0 = inlined_call_operand.vmem [shape: bf16[2,32,640], index: 0, kind: input, shape index: {}]   ;;  %s2723_s1 = inlined_call_operand.vmem [shape: bf16[8,8,32], index: 1, kind: input, shape index: {}]   ;;  %s2724_s2 = inlined_call_operand.vmem [shape: bf16[8,512], index: 2, kind: input, shape index: {}]   ;;  %s2725_s3 = inlined_call_operand.vmem [shape: f32[2,8,512], index: 3, kind: output, shape index: {}]  }
   0x1   :  { %s1972_s14 = smov 0  }
   0x2 LB: > { %s25_s15 = sadd.s32 1, %s1928_s13  ;;  %p1711_p0 = scmp.ge.s32.totalorder %s1932_s14, 1  ;;  %s1932_s14 = sphi %s1972_s14, %s13_s14   ;;  %s1928_s13 = sphi %s1970_s13, %s2727_s13   ;;  %s1924_s12 = sphi %s1968_s12, %s2726_s12  }
   0x3   : > { %p27_p1 = scmp.ge.s32.totalorder %s25_s15, 2  ;;  %p160_p2 = scmp.lt.s32.totalorder %s1932_s14, 3 }
   0x5   : > { %s2729_s15 = smov (%p27_p1, %s25_s15), 0  ;;  %p161_p3 = pnand %p1711_p0, %p160_p2 }
   0x6   : > { %s1934_s20 = smov (!%p161_p3), 120   ;;  %s1935_s21 = smov (!%p161_p3), 127  }
   0x7   : > { %164 = sbr.rel (%p161_p3) target bundleno = 896 (0x380), region = 32  ;;  %s1936_s22 = smov (!%p161_p3), 119  }
   0x8   : > { %s1937_s23 = smov (!%p161_p3), 64   ;;  %s1938_s24 = smov (!%p161_p3), 63  }
   0x9   : > { %s1939_s25 = smov (!%p161_p3), 56   ;;  %p192_p4 = scmp.lt.s32.totalorder (!%p161_p3), %s1924_s12, 1 }
   0xa   : > { %s1940_s30 = smov (!%p161_p3), 8   ;;  %s1941_s4 = smov (!%p161_p3), 1  }
   0xb   : > { %s1942_s5 = smov (!%p161_p3), 9   ;;  %s1943_s6 = smov (!%p161_p3), 55  }
   0xc   : > { %v211_v0 = vld [vmem:[%s2724_s2] sm:$0xff]  ;;  %v212_v1 = vld [vmem:[%s2724_s2 + $0x8] sm:$0xff]  ;;  %s2731_s12 = smov (!%p192_p4, %s1924_s12), 1  ;;  %vm567_vm0 = vcmask 982016   ;;  %vm901_vm1 = vcmask 523264   ;;  %vm300_vm2 = vcmask 1039360  }
   0xd   : > { %v237_v2 = vunpack.c.h.b16 %v211_v0  ;;  %v238_v3 = vunpack.c.l.b16 %v212_v1  ;;  %v239_v4 = vunpack.c.h.b16 %v212_v1  ;;  %v236_v5 = vunpack.c.l.b16 %v211_v0  ;;  %s1797_s26 = smul.u32 80, %s2731_s12  ;;  %s1944_s7 = smov 65  }
   0xe   : > { %vm734_vm3 = vcmask 973824   ;;  %vm1068_vm4 = vcmask 515072   ;;  %vm638_vm5 = vcmask 64512   ;;  %vm1235_vm6 = vcmask 457728   ;;  %s1945_s8 = smov 72   ;;  %s1946_s17 = smov 73  }
   0xf   : > { %v241_v6 = vpack.c.b16 %v237_v2, %v237_v2  ;;  %v242_v7 = vpack.c.b16 %v238_v3, %v238_v3  ;;  %v240_v8 = vpack.c.b16 %v236_v5, %v236_v5  ;;  %v243_v9 = vpack.c.b16 %v239_v4, %v239_v4  ;;  %s2046_s29 = scalar_lea.vmem %s2722_s0, %s1797_s26 }
  0x10   : > { %vm371_vm7 = vcmask 7168   ;;  %vm388_vm8 = vcmask 261120   ;;  %vm1402_vm9 = vcmask 449536   ;;  %vm805_vm10 = vcmask 72704  }
  0x11   : > { %v1994_v10 = vpack.i.b16 %v241_v6, %v241_v6  ;;  %v1996_v11 = vpack.i.b16 %v242_v7, %v242_v7  ;;  %v250_v12 = vshrl.u32 %v241_v6, 16  ;;  %v255_v13 = vshrl.u32 %v242_v7, 16 }
  0x12   : > { %v1998_v14 = vpack.i.b16 %v240_v8, %v240_v8  ;;  %v2000_v15 = vpack.i.b16 %v243_v9, %v243_v9  ;;  %v245_v16 = vshrl.u32 %v240_v8, 16  ;;  %v260_v17 = vshrl.u32 %v243_v9, 16 }
  0x13   : > { %v544_v18 = vperm.slane %v1994_v10, 1  ;;  %v547_v19 = vperm.slane %v1996_v11, 1  ;;  %v2004_v20 = vpack.i.b16 %v250_v12, %v250_v12  ;;  %v2006_v21 = vpack.i.b16 %v255_v13, %v255_v13 }
  0x14   : > { %v541_v22 = vperm.slane %v1998_v14, 1  ;;  %v550_v23 = vperm.slane %v2000_v15, 1  ;;  %v2010_v24 = vpack.i.b16 %v245_v16, %v245_v16  ;;  %v2012_v25 = vpack.i.b16 %v260_v17, %v260_v17 }
  0x15   : > { %v552_v26 = vunpack.c.l.bf16 %v544_v18  ;;  %v553_v27 = vunpack.c.l.bf16 %v547_v19  ;;  %v253_v28 = vperm.slane %v2004_v20, 0  ;;  %v258_v29 = vperm.slane %v2006_v21, 0 }
  0x16   : > { %v248_v30 = vperm.slane %v2010_v24, 0  ;;  %v263_v34 = vperm.slane %v2012_v25, 0  ;;  %v551_v36 = vunpack.c.l.bf16 %v541_v22  ;;  %v554_v37 = vunpack.c.l.bf16 %v550_v23 }
  0x17   : > { %v1836_v31 = vpack.i.bf16 %v553_v27, %v552_v26  ;;  %v285_v32 = vunpack.c.l.bf16 %v253_v28  ;;  %v286_v33 = vunpack.c.l.bf16 %v258_v29  ;;  %v715_v38 = vperm.slane %v2004_v20, 1  ;;  %v227_v26 = vld [vmem:[%s2046_s29 + $0x24] sm:$0xf]  ;;  %v225_v28 = vld [vmem:[%s2046_s29 + $0x14] sm:$0xff] }
  0x18   : > { %v716_v39 = vperm.slane %v2006_v21, 1  ;;  %v284_v40 = vunpack.c.l.bf16 %v248_v30  ;;  %v287_v41 = vunpack.c.l.bf16 %v263_v34  ;;  %v881_v44 = vperm.slane %v1998_v14, 2  ;;  %v222_v27 = vld [vmem:[%s2046_s29] sm:$0xff] }
  0x19   : > { %1837 = vrot.lane.b32.xlu1 %v1836_v31, %s1934_s20  ;;  %v1846_v35 = vpack.i.bf16 %v286_v33, %v285_v32  ;;  %v719_v42 = vunpack.c.l.bf16 %v715_v38  ;;  %v884_v45 = vperm.slane %v2000_v15, 2  ;;  %v1841_v46 = vpack.i.bf16 %v551_v36, %v554_v37  ;;  %v229_v31 = vld [vmem:[%s2046_s29 + $0x30] sm:$0xff] }
  0x1a   : > { %v720_v43 = vunpack.c.l.bf16 %v716_v39  ;;  %v882_v47 = vperm.slane %v1994_v10, 2  ;;  %v883_v48 = vperm.slane %v1996_v11, 2  ;;  %v1851_v50 = vpack.i.bf16 %v284_v40, %v287_v41  ;;  %v2068_v39 = vld [vmem:[%s2046_s29 + $0x28] sm:$0xff]  ;;  %v2071_v40 = vld [vmem:[%s2046_s29 + $0x3c] sm:$0xff] }
  0x1b   : > { %1847 = vrot.lane.b32.xlu0 %v1846_v35, %s1935_s21  ;;  %v714_v51 = vperm.slane %v2010_v24, 1  ;;  %v717_v52 = vperm.slane %v2012_v25, 1  ;;  %v885_v53 = vunpack.c.l.bf16 %v881_v44  ;;  %v888_v54 = vunpack.c.l.bf16 %v884_v45  ;;  %v232_v41 = vld [vmem:[%s2046_s29 + $0x44] sm:$0xff] }
  0x1c   : > { %v1856_v49 = vpack.i.bf16 %v720_v43, %v719_v42  ;;  %v886_v55 = vunpack.c.l.bf16 %v882_v47  ;;  %v887_v56 = vunpack.c.l.bf16 %v883_v48  ;;  %v1048_v60 = vperm.slane %v2010_v24, 2 }
  0x1d   : > { %v718_v57 = vunpack.c.l.bf16 %v714_v51  ;;  %v721_v58 = vunpack.c.l.bf16 %v717_v52  ;;  %v1871_v59 = vpack.i.bf16 %v885_v53, %v888_v54  ;;  %v1051_v61 = vperm.slane %v2012_v25, 2 }
  0x1e   : > { %1857 = vrot.lane.b32.xlu2 %v1856_v49, %s1936_s22  ;;  %v1866_v62 = vpack.i.bf16 %v887_v56, %v886_v55  ;;  %v1049_v63 = vperm.slane %v2004_v20, 2  ;;  %v1050_v0 = vperm.slane %v2006_v21, 2  ;;  %v1052_v2 = vunpack.c.l.bf16 %v1048_v60 }
  0x1f   : > { %v1861_v1 = vpack.i.bf16 %v718_v57, %v721_v58  ;;  %v1055_v3 = vunpack.c.l.bf16 %v1051_v61  ;;  %v1216_v8 = vperm.slane %v1994_v10, 3  ;;  %v1217_v9 = vperm.slane %v1996_v11, 3  ;;  %v230_v11 = vld [vmem:[%s2046_s29 + $0x38] sm:$0xf] }
  0x20   : > { %v1053_v4 = vunpack.c.l.bf16 %v1049_v63  ;;  %v1054_v5 = vunpack.c.l.bf16 %v1050_v0  ;;  %v1215_v17 = vperm.slane %v1998_v14, 3  ;;  %v1218_v18 = vperm.slane %v2000_v15, 3  ;;  %v233_v14 = vld [vmem:[%s2046_s29 + $0x4c] sm:$0xf]  ;;  %v224_v15 = vld [vmem:[%s2046_s29 + $0x10] sm:$0xf] }
  0x21   : > { %1842 = vrot.lane.b32.xlu1 %v1841_v46, %s1934_s20  ;;  %v1881_v6 = vpack.i.bf16 %v1052_v2, %v1055_v3  ;;  %v1220_v12 = vunpack.c.l.bf16 %v1216_v8  ;;  %v1221_v13 = vunpack.c.l.bf16 %v1217_v9  ;;  %v2054_v29 = vunpack.c.l.bf16 %v230_v11  ;;  %v226_v2 = vld [vmem:[%s2046_s29 + $0x1c] sm:$0xff] }
  0x22   : > { %v1876_v7 = vpack.i.bf16 %v1054_v5, %v1053_v4  ;;  %v1219_v19 = vunpack.c.l.bf16 %v1215_v17  ;;  %v1222_v22 = vunpack.c.l.bf16 %v1218_v18  ;;  %v2056_v30 = vunpack.c.l.bf16 %v233_v14 }
  0x23   : > { %1852 = vrot.lane.b32.xlu0 %v1851_v50, %s1935_s21  ;;  %v1886_v16 = vpack.i.bf16 %v1221_v13, %v1220_v12  ;;  %v2059_v33 = vunpack.c.l.bf16 %v224_v15  ;;  %v2061_v34 = vunpack.c.l.bf16 %v227_v26  ;;  %v2063_v35 = vunpack.c.l.bf16 %v222_v27 }
  0x24   : > { %v1891_v23 = vpack.i.bf16 %v1219_v19, %v1222_v22  ;;  %v2065_v36 = vunpack.c.l.bf16 %v225_v28  ;;  %v2074_v42 = vunpack.c.l.bf16 %v229_v31  ;;  %v2087_v53 = vunpack.c.l.bf16 %v2068_v39 }
  0x25   : > { %v2090_v54 = vunpack.c.l.bf16 %v2071_v40  ;;  %v2092_v55 = vunpack.c.l.bf16 %v232_v41  ;;  %v2098_v60 = vunpack.c.h.bf16 %v232_v41  ;;  %v2115_v8 = vunpack.c.l.bf16 %v226_v2 }
  0x26   : > { %1872 = vrot.lane.b32.xlu2 %v1871_v59, %s1937_s23  ;;  %v2096_v59 = vunpack.c.h.bf16 %v229_v31  ;;  %v2117_v12 = vunpack.c.h.bf16 %v222_v27  ;;  %v2119_v13 = vunpack.c.h.bf16 %v225_v28  ;;  %vm1139_vm11 = vcmask 531456  }
  0x27   : > { %vm1306_vm12 = vcmask 588800   ;;  %vm1473_vm13 = vcmask 596992  }
  0x29   : > { %1867 = vrot.lane.b32.xlu1 %v1866_v62, %s1937_s23 }
  0x2b   : > { %1862 = vrot.lane.b32.xlu0 %v1861_v1, %s1936_s22  ;;  %v223_v1 = vld [vmem:[%s2046_s29 + $0x8] sm:$0xff] }
  0x2e   : > { %1882 = vrot.lane.b32.xlu2 %v1881_v6, %s1938_s24 }
  0x31   : > { %1877 = vrot.lane.b32.xlu1 %v1876_v7, %s1938_s24  ;;  %v2113_v7 = vunpack.c.l.bf16 %v223_v1 }
  0x36   : > { %1892 = vrot.lane.b32.xlu2 %v1891_v23, %s1939_s25 }
  0x39   : > { %1887 = vrot.lane.b32.xlu1 %v1886_v16, %s1939_s25  ;;  %v2121_v16 = vunpack.c.h.bf16 %v223_v1 }
  0x78   : > { %v2084_v51 = vpop.permute.xlu2 %1857 }
  0x80   : > { %v2123_v19 = vpop.permute.xlu2 %1872 }
  0x81   : > { %v2134_v14 = vunpack.i.l.bf16 %v2123_v19 }
  0x8b   : > { %v2041_v10 = vpop.permute.xlu1 %1837 }
  0x8c   : > { %v1840_v43 = vunpack.i.h.bf16 %v2041_v10  ;;  %v1839_v44 = vunpack.i.l.bf16 %v2041_v10  ;;  %v2128_v10 = vunpack.c.h.bf16 %v226_v2 }
  0x8d   : > { %v2094_v56 = vpop.permute.xlu0 %1847 }
  0x8e   : > { %v569_v61 = vsel %vm567_vm0, %v1839_v44, %v1840_v43 }
  0x8f   : > { %v588_v3 = vmul.f32 %v569_v61, %v2074_v42  ;;  %v593_v4 = vmul.f32 %v569_v61, %v2092_v55  ;;  %v578_v28 = vmul.f32 %v569_v61, %v2113_v7  ;;  %v583_v31 = vmul.f32 %v569_v61, %v2115_v8 }
  0x91   : > { %v603_v17 = vpack.c.bf16 %v593_v4, %v588_v3 }
  0x93   : > { %v1843_v32 = vpop.permute.xlu1 %1842 }
  0x94   : > { %v1845_v37 = vunpack.i.h.bf16 %v1843_v32  ;;  %v1844_v38 = vunpack.i.l.bf16 %v1843_v32 }
  0x95   : > { %v1853_v11 = vpop.permute.xlu0 %1852 }
  0x96   : > { %v590_v45 = vmul.f32 %v1844_v38, %v2054_v29  ;;  %v595_v46 = vmul.f32 %v1844_v38, %v2056_v30  ;;  %v580_v47 = vmul.f32 %v1844_v38, %v2059_v33  ;;  %v585_v48 = vmul.f32 %v1844_v38, %v2061_v34 }
  0x97   : > { %v576_v49 = vmul.f32 %v1845_v37, %v2063_v35  ;;  %v581_v50 = vmul.f32 %v1845_v37, %v2065_v36  ;;  %v570_v62 = vsel %vm567_vm0, %v1840_v43, %v1844_v38  ;;  %v586_v63 = vmul.f32 %v1845_v37, %v2087_v53 }
  0x98   : > { %v605_v52 = vpack.c.bf16 %v595_v46, %v590_v45  ;;  %v600_v57 = vpack.c.bf16 %v585_v48, %v580_v47  ;;  %v591_v0 = vmul.f32 %v1845_v37, %v2090_v54  ;;  %v589_v5 = vmul.f32 %v570_v62, %v2096_v59 }
  0x99   : > { %v596_v58 = vpack.c.bf16 %v581_v50, %v576_v49  ;;  %v594_v6 = vmul.f32 %v570_v62, %v2098_v60  ;;  %v568_v23 = vsel %vm567_vm0, %v1845_v37, %v1839_v44  ;;  %v579_v32 = vmul.f32 %v570_v62, %v2121_v16 }
  0x9a   : > { %636 = vrot.lane.b32.xlu2 %v605_v52, %s1940_s30  ;;  %626 = vrot.lane.b32.xlu0 %v600_v57, %s1940_s30  ;;  %v601_v9 = vpack.c.bf16 %v591_v0, %v586_v63  ;;  %v577_v26 = vmul.f32 %v568_v23, %v2117_v12  ;;  %v582_v27 = vmul.f32 %v568_v23, %v2119_v13  ;;  %v2143_v38 = vunpack.i.h.bf16 %v1853_v11 }
  0x9b   : > { %618 = vrot.lane.b32.xlu1 %v596_v58, %s1940_s30  ;;  %v604_v18 = vpack.c.bf16 %v594_v6, %v589_v5  ;;  %v2125_v22 = vpop.permute.xlu1 %1867  ;;  %v584_v37 = vmul.f32 %v570_v62, %v2128_v10  ;;  %v598_v44 = vpack.c.bf16 %v583_v31, %v578_v28  ;;  %v2150_v46 = vunpack.c.h.bf16 %v2068_v39 }
  0x9c   : > { %v1870_v15 = vunpack.i.h.bf16 %v2125_v22  ;;  %v597_v43 = vpack.c.bf16 %v582_v27, %v577_v26  ;;  %v2153_v47 = vunpack.c.h.bf16 %v2071_v40  ;;  %v309_v48 = vmul.f32 %v2143_v38, %v2063_v35 }
  0x9d   : > { %v599_v45 = vpack.c.bf16 %v584_v37, %v579_v32  ;;  %v314_v49 = vmul.f32 %v2143_v38, %v2065_v36  ;;  %v1863_v40 = vpop.permute.xlu0 %1862  ;;  %v587_v52 = vmul.f32 %v568_v23, %v2150_v46  ;;  %v1869_v58 = vunpack.i.l.bf16 %v2125_v22 }
  0x9e   : > { %v2147_v41 = vsel %vm901_vm1, %v1870_v15, %v2134_v14  ;;  %v592_v57 = vmul.f32 %v568_v23, %v2153_v47  ;;  %v2169_v63 = vunpack.i.l.bf16 %v1863_v40  ;;  %v1854_v0 = vunpack.i.l.bf16 %v1853_v11 }
  0x9f   : > { %v923_v50 = vmul.f32 %v2147_v41, %v2096_v59  ;;  %v928_v39 = vmul.f32 %v2147_v41, %v2098_v60  ;;  %v329_v61 = vpack.c.bf16 %v314_v49, %v309_v48  ;;  %v2174_v2 = vsel %vm901_vm1, %v1869_v58, %v1870_v15 }
  0xa0   : > { %v602_v1 = vpack.c.bf16 %v592_v57, %v587_v52  ;;  %v757_v3 = vmul.f32 %v2169_v63, %v2054_v29  ;;  %v762_v4 = vmul.f32 %v2169_v63, %v2056_v30  ;;  %v313_v5 = vmul.f32 %v1854_v0, %v2059_v33 }
  0xa1   : > { %v938_v62 = vpack.c.bf16 %v928_v39, %v923_v50  ;;  %v318_v6 = vmul.f32 %v1854_v0, %v2061_v34  ;;  %v2189_v11 = vunpack.i.h.bf16 %v1863_v40  ;;  %v1850_v32 = vunpack.i.h.bf16 %v2094_v56 }
  0xa2   : > { %628 = vrot.lane.b32.xlu2 %v601_v9, %s1940_s30  ;;  %632 = vrot.lane.b32.xlu0 %v603_v17, %s1940_s30  ;;  %v922_v9 = vmul.f32 %v2174_v2, %v2074_v42  ;;  %v927_v17 = vmul.f32 %v2174_v2, %v2092_v55  ;;  %v1849_v37 = vunpack.i.l.bf16 %v2094_v56  ;;  %v319_v40 = vmul.f32 %v2143_v38, %v2087_v53 }
  0xa3   : > { %634 = vrot.lane.b32.xlu1 %v604_v18, %s1940_s30  ;;  %v772_v18 = vpack.c.bf16 %v762_v4, %v757_v3  ;;  %v333_v23 = vpack.c.bf16 %v318_v6, %v313_v5  ;;  %v753_v26 = vmul.f32 %v2189_v11, %v2087_v53  ;;  %v758_v27 = vmul.f32 %v2189_v11, %v2090_v54 }
  0xa4   : > { %v937_v15 = vpack.c.bf16 %v927_v17, %v922_v9  ;;  %v743_v28 = vmul.f32 %v2189_v11, %v2063_v35  ;;  %v748_v31 = vmul.f32 %v2189_v11, %v2065_v36  ;;  %v302_v49 = vsel %vm300_vm2, %v1849_v37, %v1850_v32 }
  0xa5   : > { %v321_v39 = vmul.f32 %v302_v49, %v2074_v42  ;;  %v326_v56 = vmul.f32 %v302_v49, %v2092_v55  ;;  %v324_v52 = vmul.f32 %v2143_v38, %v2090_v54  ;;  %v311_v57 = vmul.f32 %v302_v49, %v2113_v7 }
  0xa6   : > { %v763_v48 = vpack.c.bf16 %v748_v31, %v743_v28  ;;  %v303_v4 = vsel %vm300_vm2, %v1850_v32, %v1854_v0  ;;  %v301_v5 = vsel %vm300_vm2, %v2143_v38, %v1849_v37  ;;  %v747_v17 = vmul.f32 %v2169_v63, %v2059_v33 }
  0xa7   : > { %v322_v6 = vmul.f32 %v303_v4, %v2096_v59  ;;  %v327_v9 = vmul.f32 %v303_v4, %v2098_v60  ;;  %v317_v28 = vmul.f32 %v303_v4, %v2128_v10  ;;  %v912_v31 = vmul.f32 %v2174_v2, %v2113_v7 }
  0xa8   : > { %v917_v32 = vmul.f32 %v2174_v2, %v2115_v8  ;;  %v913_v37 = vmul.f32 %v2147_v41, %v2121_v16 }
  0xaa   : > { %620 = vrot.lane.b32.xlu2 %v597_v43, %s1940_s30  ;;  %622 = vrot.lane.b32.xlu0 %v598_v44, %s1940_s30  ;;  %v323_v43 = vmul.f32 %v1854_v0, %v2054_v29  ;;  %v328_v44 = vmul.f32 %v1854_v0, %v2056_v30  ;;  %v320_v0 = vmul.f32 %v301_v5, %v2150_v46 }
  0xab   : > { %624 = vrot.lane.b32.xlu1 %v599_v45, %s1940_s30  ;;  %v768_v45 = vpack.c.bf16 %v758_v27, %v753_v26  ;;  %v312_v27 = vmul.f32 %v303_v4, %v2121_v16  ;;  %v310_v4 = vmul.f32 %v301_v5, %v2117_v12 }
  0xac   : > { %v338_v50 = vpack.c.bf16 %v328_v44, %v323_v43  ;;  %v918_v43 = vmul.f32 %v2147_v41, %v2128_v10  ;;  %v2246_v44 = vunpack.i.h.bf16 %v2123_v19 }
  0xae   : > { %v2254_v2 = vsel %vm901_vm1, %v2246_v44, %v1869_v58 }
  0xaf   : > { %v921_v22 = vmul.f32 %v2254_v2, %v2150_v46  ;;  %v926_v58 = vmul.f32 %v2254_v2, %v2153_v47 }
  0xb2   : > { %351 = vrot.lane.b32.xlu2 %v329_v61, %s1941_s4  ;;  %630 = vrot.lane.b32.xlu0 %v602_v1, %s1940_s30  ;;  %v316_v61 = vmul.f32 %v302_v49, %v2115_v8  ;;  %v334_v1 = vpack.c.bf16 %v324_v52, %v319_v40  ;;  %v332_v49 = vpack.c.bf16 %v317_v28, %v312_v27  ;;  %s1788_s30 = sshll.u32 %s2731_s12, 5 }
  0xb3   : > { %968 = vrot.lane.b32.xlu1 %v938_v62, %s1937_s23  ;;  %v336_v62 = vpack.c.bf16 %v326_v56, %v321_v39  ;;  %v933_v39 = vpack.c.bf16 %v918_v43, %v913_v37  ;;  %v1860_v56 = vunpack.i.h.bf16 %v2084_v51 }
  0xb4   : > { %v331_v3 = vpack.c.bf16 %v316_v61, %v311_v57  ;;  %v2268_v57 = vpop.permute.xlu2 %1882  ;;  %v936_v61 = vpack.c.bf16 %v926_v58, %v921_v22 }
  0xba   : > { %803 = vrot.lane.b32.xlu2 %v772_v18, %s1942_s5  ;;  %966 = vrot.lane.b32.xlu0 %v937_v15, %s1937_s23  ;;  %v752_v18 = vmul.f32 %v2169_v63, %v2061_v34  ;;  %v337_v15 = vpack.c.bf16 %v327_v9, %v322_v6  ;;  %v315_v6 = vmul.f32 %v301_v5, %v2119_v13 }
  0xbb   : > { %359 = vrot.lane.b32.xlu1 %v333_v23, %s1941_s4  ;;  %v325_v23 = vmul.f32 %v301_v5, %v2153_v47 }
  0xbc   : > { %v767_v38 = vpack.c.bf16 %v752_v18, %v747_v17  ;;  %v1382_v18 = vperm.slane %v2010_v24, 3  ;;  %v2287_v27 = vpop.permute.xlu2 %1892 }
  0xbd   : > { %v335_v26 = vpack.c.bf16 %v325_v23, %v320_v0  ;;  %v1385_v0 = vperm.slane %v2012_v25, 3 }
  0xbe   : > { %v1386_v5 = vunpack.c.l.bf16 %v1382_v18 }
  0xbf   : > { %v1389_v28 = vunpack.c.l.bf16 %v1385_v0 }
  0xc2   : > { %795 = vrot.lane.b32.xlu2 %v768_v45, %s1942_s5  ;;  %369 = vrot.lane.b32.xlu0 %v338_v50, %s1941_s4  ;;  %v1383_v45 = vperm.slane %v2004_v20, 3  ;;  %v932_v50 = vpack.c.bf16 %v917_v32, %v912_v31  ;;  %v924_v20 = vmul.f32 %v2134_v14, %v2054_v29  ;;  %v1901_v32 = vpack.i.bf16 %v1386_v5, %v1389_v28 }
  0xc3   : > { %785 = vrot.lane.b32.xlu1 %v763_v48, %s1942_s5  ;;  %v1384_v48 = vperm.slane %v2006_v21, 3  ;;  %v929_v21 = vmul.f32 %v2134_v14, %v2056_v30  ;;  %v1885_v28 = vunpack.i.h.bf16 %v2268_v57 }
  0xc4   : > { %v1387_v19 = vunpack.c.l.bf16 %v1383_v45 }
  0xc5   : > { %v1388_v41 = vunpack.c.l.bf16 %v1384_v48  ;;  %v939_v52 = vpack.c.bf16 %v929_v21, %v924_v20  ;;  %v2297_v48 = vpop.permute.xlu1 %1877  ;;  %v915_v20 = vmul.f32 %v2246_v44, %v2065_v36  ;;  %v1884_v21 = vunpack.i.l.bf16 %v2268_v57 }
  0xc6   : > { %v1880_v22 = vunpack.i.h.bf16 %v2297_v48  ;;  %v1092_v57 = vmul.f32 %v1885_v28, %v2090_v54 }
  0xc7   : > { %v1896_v40 = vpack.i.bf16 %v1388_v41, %v1387_v19  ;;  %v1096_v0 = vmul.f32 %v1884_v21, %v2056_v30 }
  0xca   : > { %365 = vrot.lane.b32.xlu2 %v336_v62, %s1941_s4  ;;  %361 = vrot.lane.b32.xlu0 %v334_v1, %s1941_s4  ;;  %v737_v62 = vsel %vm734_vm3, %v1860_v56, %v2169_v63  ;;  %v920_v1 = vmul.f32 %v2246_v44, %v2087_v53  ;;  %v1859_v63 = vunpack.i.l.bf16 %v2084_v51 }
  0xcb   : > { %355 = vrot.lane.b32.xlu1 %v331_v3, %s1941_s4  ;;  %v925_v3 = vmul.f32 %v2246_v44, %v2090_v54  ;;  %v756_v9 = vmul.f32 %v737_v62, %v2096_v59  ;;  %v761_v17 = vmul.f32 %v737_v62, %v2098_v60  ;;  %v746_v25 = vmul.f32 %v737_v62, %v2121_v16 }
  0xcc   : > { %v751_v31 = vmul.f32 %v737_v62, %v2128_v10  ;;  %v735_v45 = vsel %vm734_vm3, %v2189_v11, %v1859_v63  ;;  %v910_v11 = vmul.f32 %v2246_v44, %v2063_v35  ;;  %v911_v44 = vmul.f32 %v2254_v2, %v2117_v12 }
  0xcd   : > { %v935_v23 = vpack.c.bf16 %v925_v3, %v920_v1  ;;  %v916_v62 = vmul.f32 %v2254_v2, %v2119_v13  ;;  %v754_v1 = vmul.f32 %v735_v45, %v2150_v46  ;;  %v759_v3 = vmul.f32 %v735_v45, %v2153_v47 }
  0xce   : > { %v766_v43 = vpack.c.bf16 %v751_v31, %v746_v25  ;;  %v1091_v2 = vmul.f32 %v1884_v21, %v2054_v29 }
  0xd2   : > { %367 = vrot.lane.b32.xlu2 %v337_v15, %s1941_s4  ;;  %793 = vrot.lane.b32.xlu0 %v767_v38, %s1942_s5  ;;  %v330_v15 = vpack.c.bf16 %v315_v6, %v310_v4  ;;  %v771_v38 = vpack.c.bf16 %v761_v17, %v756_v9  ;;  %v931_v9 = vpack.c.bf16 %v916_v62, %v911_v44 }
  0xd3   : > { %363 = vrot.lane.b32.xlu1 %v335_v26, %s1941_s4  ;;  %v736_v26 = vsel %vm734_vm3, %v1859_v63, %v1860_v56  ;;  %v769_v17 = vpack.c.bf16 %v759_v3, %v754_v1  ;;  %v1077_v44 = vmul.f32 %v1885_v28, %v2063_v35  ;;  %v1082_v62 = vmul.f32 %v1885_v28, %v2065_v36 }
  0xd4   : > { %v755_v51 = vmul.f32 %v736_v26, %v2074_v42  ;;  %v760_v24 = vmul.f32 %v736_v26, %v2092_v55  ;;  %v745_v19 = vmul.f32 %v736_v26, %v2113_v7  ;;  %v750_v41 = vmul.f32 %v736_v26, %v2115_v8 }
  0xd6   : > { %v770_v37 = vpack.c.bf16 %v760_v24, %v755_v51  ;;  %v765_v56 = vpack.c.bf16 %v750_v41, %v745_v19  ;;  %v1879_v51 = vunpack.i.l.bf16 %v2297_v48  ;;  %v1106_v24 = vpack.c.bf16 %v1096_v0, %v1091_v2 }
  0xd7   : > { %v1086_v19 = vmul.f32 %v1884_v21, %v2061_v34 }
  0xda   : > { %357 = vrot.lane.b32.xlu2 %v332_v49, %s1941_s4  ;;  %956 = vrot.lane.b32.xlu0 %v932_v50, %s1937_s23  ;;  %v744_v50 = vmul.f32 %v735_v45, %v2117_v12 }
  0xdb   : > { %958 = vrot.lane.b32.xlu1 %v933_v39, %s1937_s23  ;;  %v749_v39 = vmul.f32 %v735_v45, %v2119_v13 }
  0xdd   : > { %v764_v58 = vpack.c.bf16 %v749_v39, %v744_v50  ;;  %v1081_v39 = vmul.f32 %v1884_v21, %v2059_v33 }
  0xe2   : > { %970 = vrot.lane.b32.xlu2 %v939_v52, %s1937_s23  ;;  %964 = vrot.lane.b32.xlu0 %v936_v61, %s1937_s23  ;;  %v1071_v52 = vsel %vm1068_vm4, %v1880_v22, %v1884_v21  ;;  %v1894_v21 = vunpack.i.l.bf16 %v2287_v27 }
  0xe3   : > { %1897 = vrot.lane.b32.xlu1 %v1896_v40, %s1943_s6  ;;  %v930_v40 = vpack.c.bf16 %v915_v20, %v910_v11  ;;  %v1090_v4 = vmul.f32 %v1071_v52, %v2096_v59  ;;  %v1095_v6 = vmul.f32 %v1071_v52, %v2098_v60  ;;  %v1080_v26 = vmul.f32 %v1071_v52, %v2121_v16 }
  0xe4   : > { %v1085_v5 = vmul.f32 %v1071_v52, %v2128_v10 }
  0xe5   : > { %v1105_v63 = vpack.c.bf16 %v1095_v6, %v1090_v4 }
  0xe6   : > { %v1100_v31 = vpack.c.bf16 %v1085_v5, %v1080_v26 }
  0xea   : > { %962 = vrot.lane.b32.xlu2 %v935_v23, %s1937_s23  ;;  %353 = vrot.lane.b32.xlu0 %v330_v15, %s1941_s4  ;;  %v2334_v23 = vpop.permute.xlu1 %1887  ;;  %v914_v15 = vmul.f32 %v2134_v14, %v2059_v33 }
  0xeb   : > { %801 = vrot.lane.b32.xlu1 %v771_v38, %s1942_s5  ;;  %v919_v38 = vmul.f32 %v2134_v14, %v2061_v34  ;;  %v1890_v11 = vunpack.i.h.bf16 %v2334_v23  ;;  %v1889_v20 = vunpack.i.l.bf16 %v2334_v23 }
  0xed   : > { %v934_v25 = vpack.c.bf16 %v919_v38, %v914_v15  ;;  %v1238_v2 = vsel %vm1235_vm6, %v1890_v11, %v1894_v21  ;;  %v1069_v15 = vsel %vm1068_vm4, %v1885_v28, %v1879_v51 }
  0xee   : > { %v1257_v26 = vmul.f32 %v1238_v2, %v2096_v59  ;;  %v1262_v5 = vmul.f32 %v1238_v2, %v2098_v60 }
  0xf2   : > { %1902 = vrot.lane.b32.xlu2 %v1901_v32, %s1943_s6  ;;  %799 = vrot.lane.b32.xlu0 %v770_v37, %s1942_s5  ;;  %v1070_v32 = vsel %vm1068_vm4, %v1879_v51, %v1880_v22  ;;  %v1087_v37 = vmul.f32 %v1885_v28, %v2087_v53  ;;  %v1093_v28 = vmul.f32 %v1069_v15, %v2153_v47  ;;  %s209_s6 = scalar_lea.vmem %s2725_s3, %s1788_s30 }
  0xf3   : > { %791 = vrot.lane.b32.xlu1 %v766_v43, %s1942_s5  ;;  %v1089_v48 = vmul.f32 %v1070_v32, %v2074_v42  ;;  %v1094_v50 = vmul.f32 %v1070_v32, %v2092_v55  ;;  %v1079_v4 = vmul.f32 %v1070_v32, %v2113_v7  ;;  %v1084_v6 = vmul.f32 %v1070_v32, %v2115_v8 }
  0xf4   : > { %v2301_v49 = vpop.permute.xlu2 %636  ;;  %v1102_v22 = vpack.c.bf16 %v1092_v57, %v1087_v37  ;;  %v2399_v37 = vunpack.i.h.bf16 %v2287_v27  ;;  %v1247_v27 = vmul.f32 %v1238_v2, %v2121_v16 }
  0xf5   : > { %v1099_v0 = vpack.c.bf16 %v1084_v6, %v1079_v4 }
  0xfa   : > { %787 = vrot.lane.b32.xlu2 %v764_v58, %s1942_s5  ;;  %789 = vrot.lane.b32.xlu0 %v765_v56, %s1942_s5  ;;  %v1104_v58 = vpack.c.bf16 %v1094_v50, %v1089_v48  ;;  %v1101_v56 = vpack.c.bf16 %v1086_v19, %v1081_v39  ;;  %v1236_v39 = vsel %vm1235_vm6, %v2399_v37, %v1889_v20 }
  0xfb   : > { %952 = vrot.lane.b32.xlu1 %v930_v40, %s1937_s23  ;;  %v1237_v40 = vsel %vm1235_vm6, %v1889_v20, %v1890_v11  ;;  %v1252_v11 = vmul.f32 %v1238_v2, %v2128_v10  ;;  %v1083_v20 = vmul.f32 %v1069_v15, %v2119_v13  ;;  %v1253_v2 = vmul.f32 %v1894_v21, %v2061_v34 }
  0xfc   : > { %v2317_v61 = vpop.permute.xlu2 %628  ;;  %v1246_v51 = vmul.f32 %v1237_v40, %v2113_v7  ;;  %v1251_v32 = vmul.f32 %v1237_v40, %v2115_v8 }
  0xfe   : > { %v1266_v50 = vpack.c.bf16 %v1251_v32, %v1246_v51 }
 0x102   : > { %954 = vrot.lane.b32.xlu2 %v931_v9, %s1937_s23  ;;  %797 = vrot.lane.b32.xlu0 %v769_v17, %s1942_s5  ;;  %v1256_v9 = vmul.f32 %v1237_v40, %v2074_v42  ;;  %v1261_v17 = vmul.f32 %v1237_v40, %v2092_v55  ;;  %v1260_v40 = vmul.f32 %v1236_v39, %v2153_v47 }
 0x103   : > { %1135 = vrot.lane.b32.xlu1 %v1105_v63, %s1944_s7  ;;  %v1097_v63 = vpack.c.bf16 %v1082_v62, %v1077_v44  ;;  %v1267_v62 = vpack.c.bf16 %v1252_v11, %v1247_v27  ;;  %v1259_v27 = vmul.f32 %v2399_v37, %v2090_v54  ;;  %v1794_v11 = vld [vmem:[%s2046_s29 + $0x38] sm:$0xf] }
 0x104   : > { %v2330_v18 = vpop.permute.xlu2 %620  ;;  %v1271_v23 = vpack.c.bf16 %v1261_v17, %v1256_v9  ;;  %v1258_v17 = vmul.f32 %v1894_v21, %v2054_v29 }
 0x10a   : > { %1137 = vrot.lane.b32.xlu2 %v1106_v24, %s1944_s7  ;;  %960 = vrot.lane.b32.xlu0 %v934_v25, %s1937_s23 }
 0x10b   : > { %1125 = vrot.lane.b32.xlu1 %v1100_v31, %s1944_s7  ;;  %v1088_v31 = vmul.f32 %v1069_v15, %v2150_v46 }
 0x10c   : > { %v2348_v14 = vpop.permute.xlu2 %351  ;;  %v2352_v43 = vpop.permute.xlu0 %626 }
 0x10d   : > { %v619_v45 = vpop.permute.xlu1 %618  ;;  %v1103_v48 = vpack.c.bf16 %v1093_v28, %v1088_v31  ;;  %v1250_v31 = vmul.f32 %v1236_v39, %v2119_v13 }
 0x10e   : > { %v2360_v41 = vsel %vm638_vm5, %v619_v45, %v2330_v18  ;;  %v1272_v45 = vpack.c.bf16 %v1262_v5, %v1257_v26  ;;  %v1263_v26 = vmul.f32 %v1894_v21, %v2056_v30  ;;  %v1245_v5 = vmul.f32 %v1236_v39, %v2117_v12 }
 0x110   : > { %v1273_v32 = vpack.c.bf16 %v1263_v26, %v1258_v17  ;;  %v1732_v17 = vld [vmem:[%s2046_s29 + $0x20] sm:$0xf0] }
 0x112   : > { %1129 = vrot.lane.b32.xlu2 %v1102_v22, %s1944_s7  ;;  %1133 = vrot.lane.b32.xlu0 %v1104_v58, %s1944_s7  ;;  %v1078_v58 = vmul.f32 %v1069_v15, %v2117_v12 }
 0x113   : > { %1127 = vrot.lane.b32.xlu1 %v1101_v56, %s1944_s7  ;;  %v1255_v56 = vmul.f32 %v1236_v39, %v2150_v46  ;;  %v1254_v39 = vmul.f32 %v2399_v37, %v2087_v53 }
 0x114   : > { %v2369_v52 = vpop.permute.xlu2 %803  ;;  %v2373_v1 = vpop.permute.xlu0 %632  ;;  %v1098_v4 = vpack.c.bf16 %v1083_v20, %v1078_v58  ;;  %v1748_v58 = vld [vmem:[%s2046_s29 + $0x48] sm:$0xf0] }
 0x115   : > { %v2375_v3 = vpop.permute.xlu1 %634  ;;  %v1270_v6 = vpack.c.bf16 %v1260_v40, %v1255_v56  ;;  %v1751_v56 = vor.u32 %v1794_v11, %v1748_v58  ;;  %v1746_v40 = vld [vmem:[%s2046_s29 + $0x34] sm:$0xf] }
 0x11a   : > { %1119 = vrot.lane.b32.xlu2 %v1097_v63, %s1944_s7  ;;  %1123 = vrot.lane.b32.xlu0 %v1099_v0, %s1944_s7  ;;  %v1248_v63 = vmul.f32 %v1894_v21, %v2059_v33 }
 0x11b   : > { %1300 = vrot.lane.b32.xlu1 %v1271_v23, %s1945_s8 }
 0x11c   : > { %v2386_v38 = vpop.permute.xlu2 %795  ;;  %v2390_v24 = vpop.permute.xlu0 %622  ;;  %v1268_v51 = vpack.c.bf16 %v1253_v2, %v1248_v63  ;;  %v2467_v2 = vld [vmem:[%s2723_s1 + $0x4] sm:$0xf] }
 0x11d   : > { %v2392_v25 = vpop.permute.xlu1 %624  ;;  %v2404_v57 = vsel %vm638_vm5, %v2330_v18, %v2390_v24 }
 0x122   : > { %1302 = vrot.lane.b32.xlu2 %v1272_v45, %s1945_s8  ;;  %1131 = vrot.lane.b32.xlu0 %v1103_v48, %s1944_s7  ;;  %v1265_v45 = vpack.c.bf16 %v1250_v31, %v1245_v5 }
 0x123   : > { %1290 = vrot.lane.b32.xlu1 %v1266_v50, %s1945_s8 }
 0x124   : > { %v2411_v19 = vpop.permute.xlu2 %365  ;;  %v2415_v18 = vpop.permute.xlu0 %630 }
 0x125   : > { %v2417_v22 = vpop.permute.xlu1 %968  ;;  %v2426_v44 = vsel %vm638_vm5, %v2415_v18, %v2373_v1 }
 0x12a   : > { %1292 = vrot.lane.b32.xlu2 %v1267_v62, %s1945_s8  ;;  %1121 = vrot.lane.b32.xlu0 %v1098_v4, %s1944_s7  ;;  %v1269_v62 = vpack.c.bf16 %v1259_v27, %v1254_v39  ;;  %v1796_v4 = vld [vmem:[%s2046_s29 + $0x44] sm:$0xf0]  ;;  %v646_v39 = vsel %vm638_vm5, %v2375_v3, %v2301_v49  ;;  %v642_v49 = vsel %vm638_vm5, %v2392_v25, %v2352_v43  ;;  %v2508_v43 = vld [vmem:[%s2723_s1] sm:$0xf] }
 0x12b   : > { %1298 = vrot.lane.b32.xlu1 %v1270_v6, %s1945_s8  ;;  %v1790_v6 = vld [vmem:[%s2046_s29 + $0x10] sm:$0xf] }
 0x12c   : > { %v368_v9 = vpop.permute.xlu2 %367  ;;  %v2434_v0 = vpop.permute.xlu0 %966  ;;  %v1735_v26 = vor.u32 %v1790_v6, %v1732_v17 }
 0x12d   : > { %v360_v23 = vpop.permute.xlu1 %359  ;;  %v378_v15 = vsel %vm371_vm7, %v2411_v19, %v368_v9  ;;  %v2444_v28 = vsel %vm901_vm1, %v2434_v0, %v2417_v22 }
 0x12e   : > { %424 = vmatpush.bf16.msra.mxu2 %v378_v15  ;;  %v1747_v15 = vor.u32 %v1796_v4, %v1746_v40 }
 0x132   : > { %1294 = vrot.lane.b32.xlu2 %v1268_v51, %s1945_s8  ;;  %1304 = vrot.lane.b32.xlu0 %v1273_v32, %s1945_s8  ;;  %v1249_v51 = vmul.f32 %v2399_v37, %v2065_v36  ;;  %v1730_v32 = vld [vmem:[%s2046_s29 + $0xc] sm:$0xf] }
 0x133   : > { %1288 = vrot.lane.b32.xlu1 %v1265_v45, %s1945_s8  ;;  %v1792_v45 = vld [vmem:[%s2046_s29 + $0x1c] sm:$0xf0] }
 0x134   : > { %v358_v21 = vpop.permute.xlu2 %357  ;;  %v370_v48 = vpop.permute.xlu0 %369  ;;  %v1731_v27 = vor.u32 %v1792_v45, %v1730_v32 }
 0x135   : > { %v2449_v50 = vpop.permute.xlu1 %785  ;;  %v379_v20 = vsel %vm371_vm7, %v368_v9, %v370_v48  ;;  %v375_v63 = vsel %vm371_vm7, %v358_v21, %v360_v23  ;;  %v1244_v23 = vmul.f32 %v2399_v37, %v2063_v35  ;;  %v645_v37 = vsel %vm638_vm5, %v2373_v1, %v2375_v3 }
 0x136   : > { %437 = vmatpush.bf16.msra.mxu3 %v379_v20  ;;  %v641_v1 = vsel %vm638_vm5, %v2390_v24, %v2392_v25 }
 0x137   : > { %v1264_v11 = vpack.c.bf16 %v1249_v51, %v1244_v23 }
 0x13a   : > { %1296 = vrot.lane.b32.xlu0 %v1269_v62, %s1945_s8  ;;  %438 = vmatpush.bf16.msra.mxu3 %v375_v63 }
 0x13c   : > { %v2469_v9 = vpop.permute.xlu2 %970  ;;  %v362_v5 = vpop.permute.xlu0 %361 }
 0x13d   : > { %v2471_v31 = vpop.permute.xlu1 %355  ;;  %1719 = vmatmul.msk.bf16.vlgmr.msra.gmra.mxu3 %vm388_vm8, %v2467_v2 }
 0x13e   : > { %532 = vmatpush.bf16.msrb.mxu3 %v1751_v56  ;;  %v374_v48 = vsel %vm371_vm7, %v2471_v31, %v358_v21 }
 0x13f   : > { %425 = vmatpush.bf16.msra.mxu2 %v374_v48 }
 0x142   : > { %533 = vmatpush.bf16.msrb.mxu3 %v1735_v26  ;;  %1718 = vmatmul.msk.bf16.vlgmr.msra.gmra.mxu2 %vm388_vm8, %v2467_v2 }
 0x143   : > { %519 = vmatpush.bf16.msrb.mxu2 %v1747_v15  ;;  %1286 = vrot.lane.b32.xlu0 %v1264_v11, %s1945_s8  ;;  %v1795_v11 = vld [vmem:[%s2046_s29 + $0x3c] sm:$0xf0] }
 0x144   : > { %v2492_v21 = vpop.permute.xlu2 %962  ;;  %v2497_v58 = vpop.permute.xlu0 %793 }
 0x145   : > { %v364_v20 = vpop.permute.xlu1 %363 }
 0x146   : > { %703 = vmatpush.bf16.msra.mxu3 %v646_v39  ;;  %v376_v56 = vsel %vm371_vm7, %v362_v5, %v364_v20  ;;  %v377_v40 = vsel %vm371_vm7, %v364_v20, %v2411_v19 }
 0x147   : > { %520 = vmatpush.bf16.msrb.mxu2 %v1731_v27  ;;  %398 = vmatpush.bf16.msra.mxu0 %v376_v56  ;;  %v1738_v27 = vld [vmem:[%s2046_s29 + $0x2c] sm:$0xf] }
 0x148   : > { %411 = vmatpush.bf16.msra.mxu1 %v377_v40 }
 0x14a   : > { %704 = vmatpush.bf16.msra.mxu3 %v642_v49  ;;  %v1740_v49 = vld [vmem:[%s2046_s29 + $0x40] sm:$0xf0] }
 0x14b   : > { %690 = vmatpush.bf16.msra.mxu2 %v645_v37  ;;  %v1793_v37 = vld [vmem:[%s2046_s29 + $0x30] sm:$0xf] }
 0x14c   : > { %v1903_v3 = vpop.permute.xlu2 %1902  ;;  %v2510_v62 = vpop.permute.xlu0 %956  ;;  %v1743_v40 = vor.u32 %v1793_v37, %v1740_v49 }
 0x14d   : > { %v2512_v4 = vpop.permute.xlu1 %958  ;;  %v2514_v6 = vunpack.i.l.bf16 %v1903_v3  ;;  %1755 = vmatmul.msk.bf16.vlgmr.msrb.gmra.mxu3 %vm388_vm8, %v2508_v43  ;;  %v2518_v19 = vunpack.i.h.bf16 %v1903_v3 }
 0x14f   : > { %691 = vmatpush.bf16.msra.mxu2 %v641_v1  ;;  %v1425_v24 = vmul.f32 %v2514_v6, %v2054_v29  ;;  %v1430_v25 = vmul.f32 %v2514_v6, %v2056_v30  ;;  %v1421_v63 = vmul.f32 %v2518_v19, %v2087_v53  ;;  %v1426_v15 = vmul.f32 %v2518_v19, %v2090_v54 }
 0x150   : > { %v1411_v1 = vmul.f32 %v2518_v19, %v2063_v35  ;;  %v1416_v3 = vmul.f32 %v2518_v19, %v2065_v36 }
 0x151   : > { %v1440_v17 = vpack.c.bf16 %v1430_v25, %v1425_v24  ;;  %v1436_v23 = vpack.c.bf16 %v1426_v15, %v1421_v63  ;;  %v1722_v24 = vld [vmem:[%s2046_s29 + $0x4] sm:$0xf]  ;;  %v1791_v25 = vld [vmem:[%s2046_s29 + $0x14] sm:$0xf0] }
 0x152   : > { %1754 = vmatmul.msk.bf16.vlgmr.msrb.gmra.mxu2 %vm388_vm8, %v2508_v43 }
 0x153   : > { %1471 = vrot.lane.b32.xlu1 %v1440_v17, %s1946_s17 }
 0x154   : > { %v2531_v29 = vpop.permute.xlu0 %964  ;;  %v2536_v45 = vpop.permute.xlu2 %787 }
 0x155   : > { %v1898_v30 = vpop.permute.xlu1 %1897 }
 0x156   : > { %v1900_v26 = vunpack.i.h.bf16 %v1898_v30  ;;  %v1899_v5 = vunpack.i.l.bf16 %v1898_v30  ;;  %v1789_v30 = vld [vmem:[%s2046_s29 + $0x8] sm:$0xf] }
 0x158   : > { %v1404_v51 = vsel %vm1402_vm9, %v1899_v5, %v1900_v26  ;;  %v1405_v32 = vsel %vm1402_vm9, %v1900_v26, %v2514_v6  ;;  %v1724_v26 = vld [vmem:[%s2046_s29 + $0x18] sm:$0xf0] }
 0x159   : > { %v1423_v53 = vmul.f32 %v1404_v51, %v2074_v42  ;;  %v1428_v54 = vmul.f32 %v1404_v51, %v2092_v55  ;;  %v1424_v48 = vmul.f32 %v1405_v32, %v2096_v59  ;;  %v1429_v39 = vmul.f32 %v1405_v32, %v2098_v60  ;;  %v2550_v42 = vld [vmem:[%s2723_s1 + $0x8] sm:$0xf] }
 0x15a   : > { %v1739_v55 = vor.u32 %v1795_v11, %v1738_v27  ;;  %v1413_v35 = vmul.f32 %v1404_v51, %v2113_v7  ;;  %v1418_v36 = vmul.f32 %v1404_v51, %v2115_v8  ;;  %v1403_v8 = vsel %vm1402_vm9, %v2518_v19, %v1899_v5 }
 0x15b   : > { %1463 = vrot.lane.b32.xlu1 %v1436_v23, %s1946_s17  ;;  %v1438_v20 = vpack.c.bf16 %v1428_v54, %v1423_v53  ;;  %v1439_v56 = vpack.c.bf16 %v1429_v39, %v1424_v48  ;;  %v1414_v23 = vmul.f32 %v1405_v32, %v2121_v16  ;;  %v1727_v53 = vor.u32 %v1789_v30, %v1724_v26 }
 0x15c   : > { %v354_v59 = vpop.permute.xlu0 %353  ;;  %v2574_v54 = vpop.permute.xlu2 %954  ;;  %v1433_v7 = vpack.c.bf16 %v1418_v36, %v1413_v35  ;;  %v1422_v19 = vmul.f32 %v1403_v8, %v2150_v46  ;;  %v1415_v5 = vmul.f32 %v2514_v6, %v2059_v33  ;;  %v1420_v39 = vmul.f32 %v2514_v6, %v2061_v34  ;;  %v2608_v46 = vld [vmem:[%s2723_s1 + $0xc] sm:$0xf] }
 0x15d   : > { %v802_v60 = vpop.permute.xlu1 %801  ;;  %1467 = vrot.lane.b32.xlu2 %v1438_v20, %s1946_s17  ;;  %1469 = vrot.lane.b32.xlu0 %v1439_v56, %s1946_s17  ;;  %v372_v63 = vsel %vm371_vm7, %v2348_v14, %v354_v59  ;;  %v373_v15 = vsel %vm371_vm7, %v354_v59, %v2471_v31  ;;  %v1419_v14 = vmul.f32 %v1405_v32, %v2128_v10 }
 0x15e   : > { %v813_v17 = vsel %vm805_vm10, %v802_v60, %v2369_v52  ;;  %1760 = vmatmul.msk.bf16.vlgmr.msra.gmra.mxu3 %vm388_vm8, %v2550_v42  ;;  %399 = vmatpush.bf16.msra.mxu0 %v372_v63  ;;  %v1723_v52 = vor.u32 %v1791_v25, %v1722_v24  ;;  %v1431_v31 = vpack.c.bf16 %v1416_v3, %v1411_v1 }
 0x15f   : > { %412 = vmatpush.bf16.msra.mxu1 %v373_v15  ;;  %870 = vmatpush.bf16.msrb.mxu3 %v813_v17  ;;  %v1434_v16 = vpack.c.bf16 %v1419_v14, %v1414_v23  ;;  %v643_v10 = vsel %vm638_vm5, %v2317_v61, %v2415_v18  ;;  %v1427_v61 = vmul.f32 %v1403_v8, %v2153_v47 }
 0x160   : > { %v980_v18 = vsel %vm901_vm1, %v2417_v22, %v2469_v9  ;;  %v1435_v22 = vpack.c.bf16 %v1420_v39, %v1415_v5  ;;  %v1412_v34 = vmul.f32 %v1403_v8, %v2117_v12  ;;  %v978_v59 = vsel %vm901_vm1, %v2531_v29, %v2434_v0 }
 0x161   : > { %1716 = vmatmul.msk.bf16.vlgmr.msra.gmra.mxu0 %vm388_vm8, %v2467_v2  ;;  %v974_v0 = vsel %vm901_vm1, %v2574_v54, %v2510_v62 }
 0x162   : > { %493 = vmatpush.bf16.msrb.mxu0 %v1739_v55  ;;  %1717 = vmatmul.msk.bf16.vlgmr.msra.gmra.mxu1 %vm388_vm8, %v2467_v2 }
 0x163   : > { %506 = vmatpush.bf16.msrb.mxu1 %v1743_v40  ;;  %1759 = vmatmul.msk.bf16.vlgmr.msra.gmra.mxu2 %vm388_vm8, %v2550_v42 }
 0x164   : > { %1453 = vrot.lane.b32.xlu1 %v1431_v31, %s1946_s17  ;;  %v800_v51 = vpop.permute.xlu0 %799  ;;  %v1138_v47 = vpop.permute.xlu2 %1137  ;;  %v1776_v31 = vld [vmem:[%s2723_s1 + $0x18] sm:$0xf] }
 0x165   : > { %v792_v32 = vpop.permute.xlu1 %791  ;;  %1457 = vrot.lane.b32.xlu2 %v1433_v7, %s1946_s17  ;;  %v812_v2 = vsel %vm805_vm10, %v800_v51, %v802_v60  ;;  %1459 = vrot.lane.b32.xlu0 %v1434_v16, %s1946_s17 }
 0x166   : > { %494 = vmatpush.bf16.msrb.mxu0 %v1723_v52  ;;  %v809_v48 = vsel %vm805_vm10, %v792_v32, %v2497_v58  ;;  %857 = vmatpush.bf16.msrb.mxu2 %v812_v2 }
 0x167   : > { %507 = vmatpush.bf16.msrb.mxu1 %v1727_v53  ;;  %871 = vmatpush.bf16.msrb.mxu3 %v809_v48 }
 0x16a   : > { %664 = vmatpush.bf16.msra.mxu0 %v643_v10 }
 0x16b   : > { %677 = vmatpush.bf16.msra.mxu1 %v2426_v44  ;;  %1037 = vmatpush.bf16.msra.mxu3 %v980_v18  ;;  %v1437_v44 = vpack.c.bf16 %v1427_v61, %v1422_v19 }
 0x16c   : > { %v790_v9 = vpop.permute.xlu0 %789 }
 0x16d   : > { %v953_v58 = vpop.permute.xlu1 %952  ;;  %1465 = vrot.lane.b32.xlu2 %v1437_v44, %s1946_s17  ;;  %1461 = vrot.lane.b32.xlu0 %v1435_v22, %s1946_s17  ;;  %v808_v33 = vsel %vm805_vm10, %v790_v9, %v792_v32  ;;  %v807_v37 = vsel %vm805_vm10, %v2536_v45, %v790_v9 }
 0x16e   : > { %665 = vmatpush.bf16.msra.mxu0 %v2360_v41  ;;  %1765 = vmatmul.msk.bf16.vlgmr.msrb.gmra.mxu3 %vm388_vm8, %v2608_v46  ;;  %v1417_v41 = vmul.f32 %v1403_v8, %v2119_v13  ;;  %v1130_v13 = vpop.permute.xlu2 %1129  ;;  %v973_v40 = vsel %vm901_vm1, %v953_v58, %v2574_v54 }
 0x16f   : > { %678 = vmatpush.bf16.msra.mxu1 %v2404_v57  ;;  %858 = vmatpush.bf16.msrb.mxu2 %v808_v33  ;;  %v975_v57 = vsel %vm901_vm1, %v2510_v62, %v2512_v4  ;;  %v1771_v62 = vld [vmem:[%s2723_s1 + $0x14] sm:$0xf] }
 0x170   : > { %v1432_v6 = vpack.c.bf16 %v1417_v41, %v1412_v34 }
 0x171   : > { %1752 = vmatmul.msk.bf16.vlgmr.msrb.gmra.mxu0 %vm388_vm8, %v2508_v43 }
 0x172   : > { %1753 = vmatmul.msk.bf16.vlgmr.msrb.gmra.mxu1 %vm388_vm8, %v2508_v43  ;;  %v806_v43 = vsel %vm805_vm10, %v2449_v50, %v2536_v45  ;;  %v1766_v50 = vld [vmem:[%s2723_s1 + $0x10] sm:$0xf]  ;;  %v977_v45 = vsel %vm901_vm1, %v2492_v21, %v2531_v29 }
 0x173   : > { %1024 = vmatpush.bf16.msra.mxu2 %v2444_v28 }
 0x174   : > { %1764 = vmatmul.msk.bf16.vlgmr.msrb.gmra.mxu2 %vm388_vm8, %v2608_v46  ;;  %v798_v12 = vpop.permute.xlu0 %797 }
 0x175   : > { %v1136_v27 = vpop.permute.xlu1 %1135  ;;  %1455 = vrot.lane.b32.xlu2 %v1432_v6, %s1946_s17  ;;  %v810_v28 = vsel %vm805_vm10, %v2386_v38, %v798_v12  ;;  %v811_v11 = vsel %vm805_vm10, %v798_v12, %v800_v51 }
 0x176   : > { %831 = vmatpush.bf16.msrb.mxu0 %v810_v28  ;;  %844 = vmatpush.bf16.msrb.mxu1 %v811_v11  ;;  %v1147_v38 = vsel %vm1139_vm11, %v1136_v27, %v1138_v47  ;;  %v1120_v55 = vpop.permute.xlu2 %1119 }
 0x177   : > { %1025 = vmatpush.bf16.msra.mxu2 %v975_v57 }
 0x17a   : > { %832 = vmatpush.bf16.msrb.mxu0 %v806_v43  ;;  %845 = vmatpush.bf16.msrb.mxu1 %v807_v37 }
 0x17c   : > { %v961_v49 = vpop.permute.xlu0 %960 }
 0x17d   : > { %v1126_v20 = vpop.permute.xlu1 %1125  ;;  %v976_v56 = vsel %vm901_vm1, %v2512_v4, %v961_v49 }
 0x17e   : > { %1038 = vmatpush.bf16.msra.mxu3 %v976_v56 }
 0x181   : > { %1757 = vmatmul.msk.bf16.vlgmr.msra.gmra.mxu0 %vm388_vm8, %v2550_v42  ;;  %1770 = vmatmul.msk.bf16.vlgmr.msra.gmra.mxu3 %vm388_vm8, %v1766_v50 }
 0x182   : > { %1204 = vmatpush.bf16.msrb.mxu3 %v1147_v38  ;;  %1758 = vmatmul.msk.bf16.vlgmr.msra.gmra.mxu1 %vm388_vm8, %v2550_v42  ;;  %v1303_v42 = vpop.permute.xlu2 %1302 }
 0x183   : > { %998 = vmatpush.bf16.msra.mxu0 %v977_v45  ;;  %1011 = vmatpush.bf16.msra.mxu1 %v978_v59 }
 0x184   : > { %1769 = vmatmul.msk.bf16.vlgmr.msra.gmra.mxu2 %vm388_vm8, %v1766_v50  ;;  %v1134_v4 = vpop.permute.xlu0 %1133 }
 0x185   : > { %v1128_v60 = vpop.permute.xlu1 %1127  ;;  %v1146_v21 = vsel %vm1139_vm11, %v1134_v4, %v1136_v27  ;;  %v1781_v27 = vld [vmem:[%s2723_s1 + $0x1c] sm:$0xf] }
 0x186   : > { %v1143_v29 = vsel %vm1139_vm11, %v1126_v20, %v1128_v60  ;;  %1191 = vmatpush.bf16.msrb.mxu2 %v1146_v21 }
 0x187   : > { %999 = vmatpush.bf16.msra.mxu0 %v973_v40  ;;  %1012 = vmatpush.bf16.msra.mxu1 %v974_v0 }
 0x188   : > { %1205 = vmatpush.bf16.msrb.mxu3 %v1143_v29 }
 0x18a   : > { %v1293_v17 = vpop.permute.xlu2 %1292 }
 0x18c   : > { %v1124_v1 = vpop.permute.xlu0 %1123 }
 0x18d   : > { %v1301_v3 = vpop.permute.xlu1 %1300  ;;  %v1142_v25 = vsel %vm1139_vm11, %v1124_v1, %v1126_v20 }
 0x18e   : > { %v1313_v24 = vsel %vm1306_vm12, %v1301_v3, %v1303_v42  ;;  %1192 = vmatpush.bf16.msrb.mxu2 %v1142_v25 }
 0x191   : > { %1762 = vmatmul.msk.bf16.vlgmr.msrb.gmra.mxu0 %vm388_vm8, %v2608_v46  ;;  %1775 = vmatmul.msk.bf16.vlgmr.msrb.gmra.mxu3 %vm388_vm8, %v1771_v62 }
 0x192   : > { %1358 = vmatpush.bf16.msra.mxu2 %v1313_v24  ;;  %1763 = vmatmul.msk.bf16.vlgmr.msrb.gmra.mxu1 %vm388_vm8, %v2608_v46  ;;  %v1295_v10 = vpop.permute.xlu2 %1294 }
 0x193   : > { %v1310_v51 = vsel %vm1306_vm12, %v1293_v17, %v1295_v10 }
 0x194   : > { %1774 = vmatmul.msk.bf16.vlgmr.msrb.gmra.mxu2 %vm388_vm8, %v1771_v62  ;;  %v1132_v63 = vpop.permute.xlu0 %1131 }
 0x195   : > { %v1291_v15 = vpop.permute.xlu1 %1290  ;;  %v1144_v30 = vsel %vm1139_vm11, %v1130_v13, %v1132_v63  ;;  %v1145_v26 = vsel %vm1139_vm11, %v1132_v63, %v1134_v4 }
 0x196   : > { %v1309_v35 = vsel %vm1306_vm12, %v1291_v15, %v1293_v17  ;;  %1165 = vmatpush.bf16.msrb.mxu0 %v1144_v30  ;;  %1178 = vmatpush.bf16.msrb.mxu1 %v1145_v26 }
 0x197   : > { %1359 = vmatpush.bf16.msra.mxu2 %v1309_v35 }
 0x19c   : > { %v1122_v36 = vpop.permute.xlu0 %1121 }
 0x19d   : > { %v1299_v52 = vpop.permute.xlu1 %1298  ;;  %v1140_v23 = vsel %vm1139_vm11, %v1120_v55, %v1122_v36  ;;  %v1141_v14 = vsel %vm1139_vm11, %v1122_v36, %v1124_v1 }
 0x19e   : > { %1166 = vmatpush.bf16.msrb.mxu0 %v1140_v23  ;;  %1179 = vmatpush.bf16.msrb.mxu1 %v1141_v14  ;;  %v1312_v53 = vsel %vm1306_vm12, %v1299_v52, %v1301_v3 }
 0x1a1   : > { %1767 = vmatmul.msk.bf16.vlgmr.msra.gmra.mxu0 %vm388_vm8, %v1766_v50 }
 0x1a2   : > { %1768 = vmatmul.msk.bf16.vlgmr.msra.gmra.mxu1 %vm388_vm8, %v1766_v50 }
 0x1a3   : > { %1345 = vmatpush.bf16.msra.mxu1 %v1312_v53 }
 0x1a4   : > { %1779 = vmatmul.msk.bf16.vlgmr.msra.gmra.mxu2 %vm388_vm8, %v1776_v31  ;;  %v1305_v54 = vpop.permute.xlu0 %1304 }
 0x1a5   : > { %v1289_v7 = vpop.permute.xlu1 %1288  ;;  %v1314_v8 = vsel %vm1306_vm12, %v1303_v42, %v1305_v54 }
 0x1a6   : > { %v1308_v16 = vsel %vm1306_vm12, %v1289_v7, %v1291_v15  ;;  %1371 = vmatpush.bf16.msra.mxu3 %v1314_v8 }
 0x1a7   : > { %1346 = vmatpush.bf16.msra.mxu1 %v1308_v16 }
 0x1aa   : > { %1372 = vmatpush.bf16.msra.mxu3 %v1310_v51 }
 0x1ac   : > { %v1297_v32 = vpop.permute.xlu0 %1296 }
 0x1ad   : > { %v1311_v2 = vsel %vm1306_vm12, %v1297_v32, %v1299_v52  ;;  %1780 = vmatmul.msk.bf16.vlgmr.msra.gmra.mxu3 %vm388_vm8, %v1776_v31 }
 0x1ae   : > { %1332 = vmatpush.bf16.msra.mxu0 %v1311_v2 }
 0x1b1   : > { %1772 = vmatmul.msk.bf16.vlgmr.msrb.gmra.mxu0 %vm388_vm8, %v1771_v62 }
 0x1b2   : > { %1773 = vmatmul.msk.bf16.vlgmr.msrb.gmra.mxu1 %vm388_vm8, %v1771_v62 }
 0x1b5   : > { %v1287_v48 = vpop.permute.xlu0 %1286 }
 0x1b6   : > { %v1307_v19 = vsel %vm1306_vm12, %v1287_v48, %v1289_v7 }
 0x1b7   : > { %v1468_v61 = vpop.permute.xlu2 %1467  ;;  %1333 = vmatpush.bf16.msra.mxu0 %v1307_v19 }
 0x1bf   : > { %v1458_v18 = vpop.permute.xlu2 %1457 }
 0x1c0   : > { %v440_v5 = vpop.f32.mrf.mxu3 }
 0x1c1   : > { %1777 = vmatmul.msk.bf16.vlgmr.msra.gmra.mxu0 %vm388_vm8, %v1776_v31 }
 0x1c2   : > { %1778 = vmatmul.msk.bf16.vlgmr.msra.gmra.mxu1 %vm388_vm8, %v1776_v31 }
 0x1c5   : > { %v427_v39 = vpop.f32.mrf.mxu2  ;;  %v1472_v44 = vpop.permute.xlu1 %1471 }
 0x1c7   : > { %v1466_v46 = vpop.permute.xlu2 %1465 }
 0x1c8   : > { %v1479_v47 = vsel %vm1473_vm13, %v1466_v46, %v1468_v61  ;;  %v442_v22 = vpop.f32.mrf.mxu3 }
 0x1c9   : > { %1512 = vmatpush.bf16.msrb.mxu1 %v1479_v47 }
 0x1cd   : > { %v429_v9 = vpop.f32.mrf.mxu2  ;;  %v1464_v58 = vpop.permute.xlu1 %1463 }
 0x1ce   : > { %v1478_v33 = vsel %vm1473_vm13, %v1464_v58, %v1466_v46 }
 0x1cf   : > { %v1456_v34 = vpop.permute.xlu2 %1455  ;;  %v1470_v41 = vpop.permute.xlu0 %1469  ;;  %1499 = vmatpush.bf16.msrb.mxu0 %v1478_v33 }
 0x1d0   : > { %v1480_v57 = vsel %vm1473_vm13, %v1468_v61, %v1470_v41  ;;  %v1481_v6 = vsel %vm1473_vm13, %v1470_v41, %v1472_v44  ;;  %v1475_v12 = vsel %vm1473_vm13, %v1456_v34, %v1458_v18  ;;  %v535_v13 = vpop.f32.mrf.mxu3 }
 0x1d1   : > { %1513 = vmatpush.bf16.msrb.mxu1 %v1475_v12  ;;  %1525 = vmatpush.bf16.msrb.mxu2 %v1480_v57  ;;  %v536_v28 = vadd.f32 %v535_v13, %v440_v5 }
 0x1d2   : > { %1538 = vmatpush.bf16.msrb.mxu3 %v1481_v6 }
 0x1d4   : > { %1783 = vmatmul.msk.bf16.vlgmr.msrb.gmra.mxu1 %vm388_vm8, %v1781_v27 }
 0x1d5   : > { %v522_v11 = vpop.f32.mrf.mxu2 }
 0x1d6   : > { %v1454_v43 = vpop.permute.xlu1 %1453  ;;  %v523_v37 = vadd.f32 %v522_v11, %v427_v39 }
 0x1d7   : > { %v1474_v49 = vsel %vm1473_vm13, %v1454_v43, %v1456_v34  ;;  %v1460_v20 = vpop.permute.xlu0 %1459 }
 0x1d8   : > { %1500 = vmatpush.bf16.msrb.mxu0 %v1474_v49  ;;  %v1476_v56 = vsel %vm1473_vm13, %v1458_v18, %v1460_v20  ;;  %v537_v38 = vpop.f32.mrf.mxu3 }
 0x1d9   : > { %1526 = vmatpush.bf16.msrb.mxu2 %v1476_v56 }
 0x1db   : > { %1782 = vmatmul.msk.bf16.vlgmr.msrb.gmra.mxu0 %vm388_vm8, %v1781_v27 }
 0x1dc   : > { %1784 = vmatmul.msk.bf16.vlgmr.msrb.gmra.mxu2 %vm388_vm8, %v1781_v27 }
 0x1dd   : > { %v524_v55 = vpop.f32.mrf.mxu2 }
 0x1de   : > { %v401_v50 = vpop.f32.mrf.mxu0 }
 0x1df   : > { %v414_v45 = vpop.f32.mrf.mxu1  ;;  %v1462_v59 = vpop.permute.xlu0 %1461 }
 0x1e0   : > { %v1477_v4 = vsel %vm1473_vm13, %v1460_v20, %v1462_v59 }
 0x1e1   : > { %v706_v60 = vpop.f32.mrf.mxu3  ;;  %1539 = vmatpush.bf16.msrb.mxu3 %v1477_v4 }
 0x1e2   : > { %v713_v21 = vadd.f32 %v706_v60, %v536_v28 }
 0x1e4   : > { %1785 = vmatmul.msk.bf16.vlgmr.msrb.gmra.mxu3 %vm388_vm8, %v1781_v27 }
 0x1e6   : > { %v693_v40 = vpop.f32.mrf.mxu2  ;;  %v403_v29 = vpop.f32.mrf.mxu0 }
 0x1e7   : > { %v712_v0 = vadd.f32 %v693_v40, %v523_v37  ;;  %v416_v42 = vpop.f32.mrf.mxu1 }
 0x1e9   : > { %v708_v1 = vpop.f32.mrf.mxu3 }
 0x1ee   : > { %v695_v3 = vpop.f32.mrf.mxu2  ;;  %v496_v24 = vpop.f32.mrf.mxu0 }
 0x1ef   : > { %v509_v25 = vpop.f32.mrf.mxu1  ;;  %v497_v62 = vadd.f32 %v496_v24, %v401_v50 }
 0x1f0   : > { %v510_v17 = vadd.f32 %v509_v25, %v414_v45 }
 0x1f1   : > { %v873_v63 = vpop.f32.mrf.mxu3 }
 0x1f2   : > { %v880_v15 = vadd.f32 %v873_v63, %v713_v21 }
 0x1f6   : > { %v498_v35 = vpop.f32.mrf.mxu0 }
 0x1f7   : > { %v860_v30 = vpop.f32.mrf.mxu2  ;;  %v511_v36 = vpop.f32.mrf.mxu1 }
 0x1f8   : > { %v879_v26 = vadd.f32 %v860_v30, %v712_v0 }
 0x1f9   : > { %v875_v52 = vpop.f32.mrf.mxu3 }
 0x1fe   : > { %v667_v14 = vpop.f32.mrf.mxu0 }
 0x1ff   : > { %v862_v23 = vpop.f32.mrf.mxu2  ;;  %v680_v31 = vpop.f32.mrf.mxu1  ;;  %v710_v53 = vadd.f32 %v667_v14, %v497_v62 }
 0x200   : > { %v711_v54 = vadd.f32 %v680_v31, %v510_v17  ;;  %v1947_v23 = vmov 512.0  }
 0x201   : > { %1906 = vrcp.f32 %v1947_v23 }
 0x204   : > { %v1040_v8 = vpop.f32.mrf.mxu3 }
 0x205   : > { %v1047_v10 = vadd.f32 %v1040_v8, %v880_v15 }
 0x206   : > { %v669_v51 = vpop.f32.mrf.mxu0 }
 0x207   : > { %v1027_v7 = vpop.f32.mrf.mxu2  ;;  %v682_v32 = vpop.f32.mrf.mxu1 }
 0x208   : > { %v1046_v16 = vadd.f32 %v1027_v7, %v879_v26  ;;  %v1907_v14 = vpop.eup %1906 }
 0x209   : > { %v1555_v31 = vmul.f32 512.0, %v1907_v14  ;;  %vm1559_vm14 = vweird.f32 %v1907_v14 }
 0x20c   : > { %v1042_v48 = vpop.f32.mrf.mxu3 }
 0x20e   : > { %v834_v19 = vpop.f32.mrf.mxu0 }
 0x20f   : > { %v1029_v2 = vpop.f32.mrf.mxu2  ;;  %v847_v61 = vpop.f32.mrf.mxu1  ;;  %v877_v18 = vadd.f32 %v834_v19, %v710_v53  ;;  %v1556_v53 = vsub.f32 1.0, %v1555_v31 }
 0x210   : > { %v878_v5 = vadd.f32 %v847_v61, %v711_v54 }
 0x211   : > { %v1557_v54 = vmul.f32 %v1907_v14, %v1556_v53 }
 0x213   : > { %v1558_v7 = vadd.f32 %v1907_v14, %v1557_v54 }
 0x214   : > { %v1207_v44 = vpop.f32.mrf.mxu3 }
 0x215   : > { %v1214_v47 = vadd.f32 %v1207_v44, %v1047_v10  ;;  %v1560_v8 = vsel %vm1559_vm14, %v1907_v14, %v1558_v7 }
 0x216   : > { %v836_v22 = vpop.f32.mrf.mxu0 }
 0x217   : > { %v1194_v39 = vpop.f32.mrf.mxu2  ;;  %v849_v9 = vpop.f32.mrf.mxu1 }
 0x218   : > { %v1213_v46 = vadd.f32 %v1194_v39, %v1046_v16 }
 0x21c   : > { %v1209_v33 = vpop.f32.mrf.mxu3 }
 0x21e   : > { %v1001_v34 = vpop.f32.mrf.mxu0 }
 0x21f   : > { %v1196_v58 = vpop.f32.mrf.mxu2  ;;  %v1014_v41 = vpop.f32.mrf.mxu1  ;;  %v1044_v4 = vadd.f32 %v1001_v34, %v877_v18 }
 0x220   : > { %v1045_v60 = vadd.f32 %v1014_v41, %v878_v5 }
 0x226   : > { %v1003_v6 = vpop.f32.mrf.mxu0 }
 0x227   : > { %v1361_v57 = vpop.f32.mrf.mxu2  ;;  %v1016_v12 = vpop.f32.mrf.mxu1 }
 0x228   : > { %v1380_v1 = vadd.f32 %v1361_v57, %v1213_v46 }
 0x22e   : > { %v1168_v13 = vpop.f32.mrf.mxu0 }
 0x22f   : > { %v1363_v27 = vpop.f32.mrf.mxu2  ;;  %v1181_v28 = vpop.f32.mrf.mxu1  ;;  %v1211_v21 = vadd.f32 %v1168_v13, %v1044_v4 }
 0x230   : > { %v1374_v11 = vpop.f32.mrf.mxu3  ;;  %v1212_v29 = vadd.f32 %v1181_v28, %v1045_v60 }
 0x231   : > { %v1381_v17 = vadd.f32 %v1374_v11, %v1214_v47 }
 0x236   : > { %v1170_v43 = vpop.f32.mrf.mxu0 }
 0x237   : > { %v1183_v37 = vpop.f32.mrf.mxu1 }
 0x238   : > { %v1376_v49 = vpop.f32.mrf.mxu3 }
 0x23e   : > { %v1335_v20 = vpop.f32.mrf.mxu0 }
 0x23f   : > { %v1348_v56 = vpop.f32.mrf.mxu1  ;;  %v1378_v42 = vadd.f32 %v1335_v20, %v1211_v21 }
 0x240   : > { %v1379_v3 = vadd.f32 %v1348_v56, %v1212_v29 }
 0x246   : > { %v1337_v55 = vpop.f32.mrf.mxu0 }
 0x247   : > { %v1350_v38 = vpop.f32.mrf.mxu1 }
 0x251   : > { %v1515_v50 = vpop.f32.mrf.mxu1 }
 0x252   : > { %v1546_v25 = vadd.f32 %v1515_v50, %v1379_v3 }
 0x258   : > { %v1502_v45 = vpop.f32.mrf.mxu0 }
 0x259   : > { %v1517_v59 = vpop.f32.mrf.mxu1  ;;  %v1545_v24 = vadd.f32 %v1502_v45, %v1378_v42 }
 0x25b   : > { %v1549_v63 = vadd.f32 %v1546_v25, %v1545_v24 }
 0x25f   : > { %v1528_v0 = vpop.f32.mrf.mxu2 }
 0x260   : > { %v1504_v40 = vpop.f32.mrf.mxu0  ;;  %v1547_v62 = vadd.f32 %v1528_v0, %v1380_v1 }
 0x262   : > { %v1550_v26 = vadd.f32 %v1549_v63, %v1547_v62 }
 0x267   : > { %v1541_v15 = vpop.f32.mrf.mxu3  ;;  %v1530_v30 = vpop.f32.mrf.mxu2 }
 0x268   : > { %v1548_v35 = vadd.f32 %v1541_v15, %v1381_v17 }
 0x26a   : > { %v1551_v36 = vadd.f32 %v1550_v26, %v1548_v35 }
 0x26c   : > { %1552 = vadd.xlane.f32.xlu0 %v1551_v36 }
 0x26f   : > { %v1543_v52 = vpop.f32.mrf.mxu3 }
 0x2df   : > { %v1553_v16 = vpop.xlane.xlu0 %1552 }
 0x2e0   : > { %v1561_v10 = vmul.f32 %v1560_v8, %v1553_v16 }
 0x2e2   : > { %v1562_v51 = vsub.f32 %v1545_v24, %v1561_v10  ;;  %v1563_v32 = vsub.f32 %v1546_v25, %v1561_v10  ;;  %v1564_v2 = vsub.f32 %v1547_v62, %v1561_v10  ;;  %v1565_v48 = vsub.f32 %v1548_v35, %v1561_v10 }
 0x2e4   : > { %v1566_v19 = vmul.f32 %v1562_v51, %v1562_v51  ;;  %v1567_v61 = vmul.f32 %v1563_v32, %v1563_v32  ;;  %v1568_v18 = vmul.f32 %v1564_v2, %v1564_v2  ;;  %v1569_v39 = vmul.f32 %v1565_v48, %v1565_v48 }
 0x2e6   : > { %v1570_v5 = vadd.f32 %v1567_v61, %v1566_v19 }
 0x2e8   : > { %v1571_v44 = vadd.f32 %v1570_v5, %v1568_v18 }
 0x2ea   : > { %v1572_v46 = vadd.f32 %v1571_v44, %v1569_v39 }
 0x2ec   : > { %1573 = vadd.xlane.f32.xlu1 %v1572_v46 }
 0x35f   : > { %v1574_v47 = vpop.xlane.xlu1 %1573 }
 0x360   : > { %v1575_v22 = vmul.f32 %v1574_v47, %v1560_v8 }
 0x362   : > { %v1576_v9 = vadd.f32 1e-05, %v1575_v22 }
 0x364   : > { %1908 = vrsqrt.f32 %v1576_v9  ;;  %vm1583_vm0 = vweird.f32 %v1576_v9 }
 0x36a   : > { %v1909_v58 = vpop.eup %1908 }
 0x36b   : > { %v1578_v33 = vmul.f32 %v1909_v58, %v1576_v9  ;;  %vm1584_vm15 = vweird.f32 %v1909_v58 }
 0x36c   : > { %vm1585_vm1 = vmor %vm1583_vm0, %vm1584_vm15 }
 0x36d   : > { %v1579_v34 = vmul.f32 %v1909_v58, %v1578_v33 }
 0x36f   : > { %v1580_v41 = vmul.f32 0.5, %v1579_v34 }
 0x371   : > { %v1581_v57 = vsub.f32 1.5, %v1580_v41 }
 0x373   : > { %v1582_v6 = vmul.f32 %v1909_v58, %v1581_v57 }
 0x375   : > { %v1586_v12 = vsel %vm1585_vm1, %v1909_v58, %v1582_v6 }
 0x376   : > { %v1587_v27 = vmul.f32 %v1586_v12, %v1562_v51  ;;  %v1588_v13 = vmul.f32 %v1586_v12, %v1563_v32  ;;  %v1589_v28 = vmul.f32 %v1586_v12, %v1564_v2  ;;  %v1590_v11 = vmul.f32 %v1586_v12, %v1565_v48 }
 0x378   : > { %vm1591_vm2 = vcmp.ge.f32.partialorder %v1587_v27, 0.0  ;;  %vm1592_vm3 = vcmp.ge.f32.partialorder %v1588_v13, 0.0  ;;  %vm1593_vm4 = vcmp.ge.f32.partialorder %v1589_v28, 0.0  ;;  %vm1594_vm5 = vcmp.ge.f32.partialorder %v1590_v11, 0.0 }
 0x379   : > { %v1595_v43 = vmul.f32 0.2, %v1587_v27  ;;  %v1596_v37 = vmul.f32 0.2, %v1588_v13  ;;  %v1597_v49 = vmul.f32 0.2, %v1589_v28 }
 0x37a   : > { %v1598_v20 = vmul.f32 0.2, %v1590_v11 }
 0x37b   : > { %v1599_v56 = vsel %vm1591_vm2, %v1587_v27, %v1595_v43  ;;  %v1600_v38 = vsel %vm1592_vm3, %v1588_v13, %v1596_v37  ;;  %v1601_v55 = vsel %vm1593_vm4, %v1589_v28, %v1597_v49 }
 0x37c   : > { %v1602_v50 = vsel %vm1594_vm5, %v1590_v11, %v1598_v20  ;;  %1603 = vst [vmem:[%s209_s6] sm:$0xff] %v1599_v56 }
 0x37d   : > { %1604 = vst [vmem:[%s209_s6 + $0x8] sm:$0xff] %v1600_v38 }
 0x37e   : > { %1605 = vst [vmem:[%s209_s6 + $0x10] sm:$0xff] %v1601_v55 }
 0x37f   : > { %1606 = vst [vmem:[%s209_s6 + $0x18] sm:$0xff] %v1602_v50 }
 0x380 PF: > { %s13_s14 = sadd.s32 1, %s1932_s14   ;;  %s2726_s12 = smov %s1928_s13 }
 0x381   : > { %p10_p5 = scmp.ge.s32.totalorder %s13_s14, 4   ;;  %s2727_s13 = smov %s2729_s15 }
 0x383   :  { %12 = sbr.rel (!%p10_p5) target bundleno = 2 (0x2), region = 72 }

</bundles_post_ra>
